<compile_context>
chip_gen: v6e
topology: v6e:2x2x1
jax: 0.10.0
libtpu: 0.0.40
codegen_flags: <defaults>
</compile_context>

<pallas_src>
import functools

import jax
import jax.numpy as jnp
from jax.experimental import pallas as pl
from jax.experimental.pallas import tpu as pltpu


# ============================================================================
# Pallas kernels
# ============================================================================
def _matmul_bias_kernel(a_ref, b_ref, bias_ref, o_ref, *, relu):
    acc = jnp.dot(a_ref[...], b_ref[...], preferred_element_type=jnp.float32)
    acc = acc + bias_ref[...]
    if relu:
        acc = jnp.maximum(acc, 0.0)
    o_ref[...] = acc.astype(o_ref.dtype)


def matmul_bias(a, b, bias, relu=False):
    """o = a @ b + bias (optional ReLU).  Shapes are tiny -> single invocation,
    full-array blocks.  Callers orient the problem so the output's last (lane)
    dimension is the long one (B*L), giving unmasked lane-dense stores."""
    M = a.shape[0]
    N = b.shape[1]
    return pl.pallas_call(
        functools.partial(_matmul_bias_kernel, relu=relu),
        out_shape=jax.ShapeDtypeStruct((M, N), jnp.float32),
    )(a, b, bias)


def _fused_lstm_ae_kernel(x_ref, wih_e_ref, whh_e_ref, be_ref,
                          wih_d_ref, whh_d_ref, bd_ref,
                          wout_ref, bout_ref, y_ref, hseq_ref,
                          *, seq_len, batch):
    """All n_filters LSTM autoencoders fused into one kernel.

    Filters are packed along the lane dimension with block-diagonal weights:
    state h/c is (B, nf*H) and each gate matmul produces (B, nf*4H) (128 lanes
    for the default config).  Gate order inside the packed axis is
    [all-i | all-f | all-g | all-o], each of width nf*H, so gate slices sit at
    coarse (multiple-of-nf*H) lane offsets.
    """
    T, B = seq_len, batch
    HH = whh_e_ref.shape[0]            # n_filters * hidden

    def cell(gates, c):
        sig = jax.nn.sigmoid(gates)    # one full-width EUP pass for i, f, o
        tnh = jnp.tanh(gates)          # one full-width EUP pass for g
        i = sig[:, 0 * HH:1 * HH]
        f = sig[:, 1 * HH:2 * HH]
        g = tnh[:, 2 * HH:3 * HH]
        o = sig[:, 3 * HH:4 * HH]
        c_new = f * c + i * g
        h_new = o * jnp.tanh(c_new)
        return h_new, c_new

    # ---- encoder LSTM: input projection for every timestep in ONE matmul ----
    gx_all = jnp.dot(x_ref[...], wih_e_ref[...],
                     preferred_element_type=jnp.float32) + be_ref[...]   # (T*B, 4HH)
    whh_e = whh_e_ref[...]
    h = jnp.zeros((B, HH), jnp.float32)
    c = jnp.zeros((B, HH), jnp.float32)
    for t in range(T):                 # T is small & static -> fully unrolled
        gates = gx_all[t * B:(t + 1) * B, :] + jnp.dot(
            h, whh_e, preferred_element_type=jnp.float32)
        h, c = cell(gates, c)

    # ---- decoder LSTM: its input (h_last repeated) projection is constant ----
    gxd = jnp.dot(h, wih_d_ref[...],
                  preferred_element_type=jnp.float32) + bd_ref[...]      # (B, 4HH)
    whh_d = whh_d_ref[...]
    hd = jnp.zeros((B, HH), jnp.float32)
    cd = jnp.zeros((B, HH), jnp.float32)
    for t in range(T):
        gates = gxd + jnp.dot(hd, whh_d, preferred_element_type=jnp.float32)
        hd, cd = cell(gates, cd)
        hseq_ref[t * B:(t + 1) * B, :] = hd

    # ---- output Linear for all timesteps at once; single lane-dense store ----
    y_ref[...] = (jnp.dot(hseq_ref[...], wout_ref[...],
                          preferred_element_type=jnp.float32)
                  + bout_ref[...]).astype(y_ref.dtype)


def fused_lstm_autoencoders(x2d, pk, *, seq_len, batch):
    """x2d: (T*B, nf*F) time-major packed features -> (T*B, nf*F) reconstruction."""
    TB, NF = x2d.shape
    HH = pk['whh_e'].shape[0]
    # NOTE: B and T live in the sublane dim so both batch elements ride the
    # same recurrence step; no grid needed at these sizes (single invocation).
    # TODO(synk): for large batches on v7x, shard a batch grid axis "parallel"
    #             across the two TensorCores.
    return pl.pallas_call(
        functools.partial(_fused_lstm_ae_kernel, seq_len=seq_len, batch=batch),
        out_shape=jax.ShapeDtypeStruct((TB, NF), jnp.float32),
        scratch_shapes=[pltpu.VMEM((TB, HH), jnp.float32)],
    )(x2d, pk['wih_e'], pk['whh_e'], pk['b_e'],
      pk['wih_d'], pk['whh_d'], pk['b_d'], pk['wout'], pk['bout'])


# ============================================================================
# Forward pass (glue is plain JAX, fused by XLA under jit)
# ============================================================================
def autoencoder_forward(x, arrays, *, pad, n_subwindows):
    """x: (B, C, L) -> (B, C, L); same math as Autoencoder.forward."""
    B, C, L = x.shape
    T = n_subwindows
    F = L // T
    nf = arrays['ce_wmat'].shape[0]
    kw = arrays['ce_wmat'].shape[1] // C

    # --------- ConvEncoder: im2col + lane-dense Pallas GEMM (+ ReLU) ---------
    xp = jnp.pad(x, ((0, 0), (0, 0), (pad, pad)))
    cols = jnp.stack([xp[:, :, k:k + L] for k in range(kw)], axis=2)      # (B,C,kw,L)
    colsT = cols.transpose(1, 2, 0, 3).reshape(C * kw, B * L)             # (C*kw, B*L)
    encT = matmul_bias(arrays['ce_wmat'], colsT, arrays['ce_bias'],
                       relu=True)                                         # (nf, B*L)

    # pack every filter's (B, T, F) sub-window sequence along lanes: (T*B, nf*F)
    x2d = encT.reshape(nf, B, T, F).transpose(2, 1, 0, 3).reshape(T * B, nf * F)

    # --------- all per-filter LSTM autoencoders: ONE fused Pallas kernel -----
    y2d = fused_lstm_autoencoders(x2d, arrays['lstm'], seq_len=T, batch=B)

    # --------- ConvDecoder (ConvTranspose2d): im2col + lane-dense GEMM -------
    z = y2d.reshape(T, B, nf, F).transpose(1, 2, 0, 3).reshape(B, nf, L)
    lp = kw - 1 - pad
    zp = jnp.pad(z, ((0, 0), (0, 0), (lp, pad)))
    cols_d = jnp.stack([zp[:, :, kw - 1 - kj: kw - 1 - kj + L]
                        for kj in range(kw)], axis=2)                     # (B,nf,kw,L)
    colsT_d = cols_d.transpose(1, 2, 0, 3).reshape(nf * kw, B * L)
    outT = matmul_bias(arrays['cd_wmat'], colsT_d, arrays['cd_bias'],
                       relu=False)                                        # (C, B*L)
    return outT.reshape(C, B, L).transpose(1, 0, 2)                       # (B, C, L)


# ============================================================================
# One-time parameter preprocessing (hoisted out of the forward path)
# ============================================================================
def prepare_params(params, sample_length, n_subwindows):
    nf, _, C, kw = params['ce_w'].shape
    F = sample_length // n_subwindows
    H = F // 2
    NF, HH = nf * F, nf * H

    wih_e = jnp.zeros((NF, 4 * HH), jnp.float32)
    whh_e = jnp.zeros((HH, 4 * HH), jnp.float32)
    b_e = jnp.zeros((1, 4 * HH), jnp.float32)
    wih_d = jnp.zeros((HH, 4 * HH), jnp.float32)
    whh_d = jnp.zeros((HH, 4 * HH), jnp.float32)
    b_d = jnp.zeros((1, 4 * HH), jnp.float32)
    wout = jnp.zeros((HH, NF), jnp.float32)
    bout = jnp.zeros((1, NF), jnp.float32)

    for fi, p in enumerate(params['lstm']):
        for g in range(4):                     # PyTorch gate order i, f, g, o
            cs, ce = g * HH + fi * H, g * HH + (fi + 1) * H
            wih_e = wih_e.at[fi * F:(fi + 1) * F, cs:ce].set(
                p['enc_w_ih'][g * H:(g + 1) * H, :].T)
            whh_e = whh_e.at[fi * H:(fi + 1) * H, cs:ce].set(
                p['enc_w_hh'][g * H:(g + 1) * H, :].T)
            b_e = b_e.at[0, cs:ce].set(
                p['enc_b_ih'][g * H:(g + 1) * H] + p['enc_b_hh'][g * H:(g + 1) * H])
            wih_d = wih_d.at[fi * H:(fi + 1) * H, cs:ce].set(
                p['dec_w_ih'][g * H:(g + 1) * H, :].T)
            whh_d = whh_d.at[fi * H:(fi + 1) * H, cs:ce].set(
                p['dec_w_hh'][g * H:(g + 1) * H, :].T)
            b_d = b_d.at[0, cs:ce].set(
                p['dec_b_ih'][g * H:(g + 1) * H] + p['dec_b_hh'][g * H:(g + 1) * H])
        wout = wout.at[fi * H:(fi + 1) * H, fi * F:(fi + 1) * F].set(p['out_w'].T)
        bout = bout.at[0, fi * F:(fi + 1) * F].set(p['out_b'])

    return {
        'ce_wmat': params['ce_w'].reshape(nf, C * kw),
        'ce_bias': params['ce_b'].reshape(nf, 1),
        'cd_wmat': jnp.transpose(params['cd_w'][:, 0], (1, 0, 2)).reshape(C, nf * kw),
        'cd_bias': jnp.full((C, 1), params['cd_b'][0], jnp.float32),
        'lstm': dict(wih_e=wih_e, whh_e=whh_e, b_e=b_e,
                     wih_d=wih_d, whh_d=whh_d, b_d=b_d,
                     wout=wout, bout=bout),
    }


# ============================================================================
# Deterministic parameter initialization (synthetic, PyTorch-like uniform)
# ============================================================================
def init_params(key, sample_length, n_filters, n_channels, kernel_size, n_subwindows):
    len_sub = sample_length // n_subwindows
    enc_dim = len_sub // 2
    keys = jax.random.split(key, 4 + n_filters)

    def u(k, shape, scale):
        return jax.random.uniform(k, shape, jnp.float32, -scale, scale)

    s_ce = 1.0 / (n_channels * kernel_size) ** 0.5
    s_cd = 1.0 / (n_filters * kernel_size) ** 0.5
    params = {
        'pad': kernel_size // 2,
        'ce_w': u(keys[0], (n_filters, 1, n_channels, kernel_size), s_ce),
        'ce_b': u(keys[1], (n_filters,), s_ce),
        'cd_w': u(keys[2], (n_filters, 1, n_channels, kernel_size), s_cd),
        'cd_b': u(keys[3], (1,), s_cd),
        'lstm': [],
    }
    for i in range(n_filters):
        ks = jax.random.split(keys[4 + i], 10)
        s = 1.0 / max(enc_dim, 1) ** 0.5
        params['lstm'].append({
            'enc_w_ih': u(ks[0], (4 * enc_dim, len_sub), s),
            'enc_w_hh': u(ks[1], (4 * enc_dim, enc_dim), s),
            'enc_b_ih': u(ks[2], (4 * enc_dim,), s),
            'enc_b_hh': u(ks[3], (4 * enc_dim,), s),
            'dec_w_ih': u(ks[4], (4 * enc_dim, enc_dim), s),
            'dec_w_hh': u(ks[5], (4 * enc_dim, enc_dim), s),
            'dec_b_ih': u(ks[6], (4 * enc_dim,), s),
            'dec_b_hh': u(ks[7], (4 * enc_dim,), s),
            'out_w': u(ks[8], (len_sub, enc_dim), s),
            'out_b': u(ks[9], (len_sub,), s),
        })
    return params


# ============================================================================
# Independent pure-JAX reference (XLA convs + per-filter scan LSTMs with the
# ORIGINAL, unpacked weights) -- validates both the im2col/conv-transpose glue
# and the block-diagonal gate packing.
# ============================================================================
def _lstm_scan_ref(x_btf, w_ih, w_hh, b_ih, b_hh):
    H = w_hh.shape[1]
    B = x_btf.shape[0]
    hp = jax.lax.Precision.HIGHEST

    def step(carry, x_t):
        h, c = carry
        gates = (jnp.dot(x_t, w_ih.T, precision=hp)
                 + jnp.dot(h, w_hh.T, precision=hp) + b_ih + b_hh)
        i = jax.nn.sigmoid(gates[:, :H])
        f = jax.nn.sigmoid(gates[:, H:2 * H])
        g = jnp.tanh(gates[:, 2 * H:3 * H])
        o = jax.nn.sigmoid(gates[:, 3 * H:])
        c = f * c + i * g
        h = o * jnp.tanh(c)
        return (h, c), h

    init = (jnp.zeros((B, H), jnp.float32), jnp.zeros((B, H), jnp.float32))
    _, hs = jax.lax.scan(step, init, jnp.transpose(x_btf, (1, 0, 2)))
    return jnp.transpose(hs, (1, 0, 2))


def reference_forward(x, params, n_subwindows):
    B, C, L = x.shape
    pad = params['pad']
    hp = jax.lax.Precision.HIGHEST
    nf, _, _, kw = params['ce_w'].shape

    # ConvEncoder: Conv2d(1, nf, (C, kw), padding=(0, pad)) over (B,1,C,L) + ReLU
    # == 1-D conv with C input channels.
    enc = jax.lax.conv_general_dilated(
        x, params['ce_w'][:, 0], window_strides=(1,), padding=[(pad, pad)],
        dimension_numbers=('NCH', 'OIH', 'NCH'), precision=hp)
    enc = jnp.maximum(enc + params['ce_b'][None, :, None], 0.0)           # (B,nf,L)

    T = n_subwindows
    F = L // T
    outs = []
    for fi in range(nf):
        p = params['lstm'][fi]
        y = enc[:, fi, :].reshape(B, T, F)
        h_enc = _lstm_scan_ref(y, p['enc_w_ih'], p['enc_w_hh'],
                               p['enc_b_ih'], p['enc_b_hh'])
        h_last = h_enc[:, -1, :]
        E = h_last.shape[-1]
        dec_in = jnp.broadcast_to(h_last[:, None, :], (B, T, E))
        h_dec = _lstm_scan_ref(dec_in, p['dec_w_ih'], p['dec_w_hh'],
                               p['dec_b_ih'], p['dec_b_hh'])
        yo = jnp.dot(h_dec, p['out_w'].T, precision=hp) + p['out_b']      # (B,T,F)
        outs.append(yo.reshape(B, L))
    z = jnp.stack(outs, axis=1)                                           # (B,nf,L)

    # ConvDecoder: ConvTranspose2d(nf, 1, (C, kw), padding=(0, pad)) ==
    # correlation with the width-flipped kernel, in/out channels swapped,
    # explicit padding (kw-1-pad, pad).
    wdec = jnp.transpose(jnp.flip(params['cd_w'][:, 0], axis=-1), (1, 0, 2))  # (C,nf,kw)
    out = jax.lax.conv_general_dilated(
        z, wdec, window_strides=(1,), padding=[(kw - 1 - pad, pad)],
        dimension_numbers=('NCH', 'OIH', 'NCH'), precision=hp)
    return out + params['cd_b'][0]                                        # (B,C,L)


# ============================================================================
if __name__ == "__main__":
    # Small shapes consistent with the module's reshapes.
    batch = 2
    sample_length = 128
    n_filters = 4
    n_channels = 4
    kernel_size = 3
    n_subwindows = 8        # len_subwindows = 16, encoding_dim = 8 -> nf*4H = 128 lanes

    key = jax.random.PRNGKey(0)
    kx, kp = jax.random.split(key)
    x = jax.random.normal(kx, (batch, n_channels, sample_length), jnp.float32)
    params = init_params(kp, sample_length, n_filters, n_channels,
                         kernel_size, n_subwindows)

    # One-time weight packing / preprocessing (hoisted out of the hot path).
    arrays = prepare_params(params, sample_length, n_subwindows)

    fwd = jax.jit(functools.partial(autoencoder_forward,
                                    pad=params['pad'],
                                    n_subwindows=n_subwindows))
    out = jax.block_until_ready(fwd(x, arrays))

    ref = jax.block_until_ready(reference_forward(x, params, n_subwindows))

    assert out.shape == x.shape, (out.shape, x.shape)
    assert bool(jnp.all(jnp.isfinite(out)))
    max_err = float(jnp.max(jnp.abs(out - ref)))
    # All-f32 pipeline; tolerance covers possible bf16-pass matmul defaults on
    # TPU (packing/layout bugs would show up orders of magnitude larger).
    assert max_err < 5e-3, max_err

    print("KERNEL_OK")
</pallas_src>

<mosaic_0001>
module attributes {stable_mosaic.version = 11 : i64} {
  func.func @_matmul_bias_kernel(%arg0: memref<4x12xf32, #tpu.memory_space<vmem>>, %arg1: memref<12x256xf32, #tpu.memory_space<vmem>>, %arg2: memref<4x1xf32, #tpu.memory_space<vmem>>, %arg3: memref<4x256xf32, #tpu.memory_space<vmem>>) attributes {dimension_semantics = [], scalar_prefetch = 0 : i64, scratch_operands = 0 : i64, tpu.core_type = #tpu.core_type<tc>} {
    %c0 = arith.constant 0 : index
    %c0_0 = arith.constant 0 : index
    %0 = vector.load %arg0[%c0, %c0_0] : memref<4x12xf32, #tpu.memory_space<vmem>>, vector<4x12xf32>
    %c0_1 = arith.constant 0 : index
    %c0_2 = arith.constant 0 : index
    %1 = vector.load %arg1[%c0_1, %c0_2] : memref<12x256xf32, #tpu.memory_space<vmem>>, vector<12x256xf32>
    %cst = arith.constant dense<0.000000e+00> : vector<4x256xf32>
    %2 = tpu.matmul %0, %1, %cst {dimension_numbers = #tpu.dot_dimension_numbers<[1], [0], [0], [1], [0, 0, 1, 1], [], []>} : vector<4x12xf32>, vector<12x256xf32>, vector<4x256xf32> -> vector<4x256xf32>
    %c0_3 = arith.constant 0 : index
    %c0_4 = arith.constant 0 : index
    %3 = vector.load %arg2[%c0_3, %c0_4] : memref<4x1xf32, #tpu.memory_space<vmem>>, vector<4x1xf32>
    %4 = vector.broadcast %3 : vector<4x1xf32> to vector<4x256xf32>
    %5 = arith.addf %2, %4 : vector<4x256xf32>
    %cst_5 = arith.constant 0.000000e+00 : f32
    %6 = vector.broadcast %cst_5 : f32 to vector<4x256xf32>
    %7 = arith.maximumf %5, %6 : vector<4x256xf32>
    %c0_6 = arith.constant 0 : index
    %c0_7 = arith.constant 0 : index
    %8 = vector.load %arg3[%c0_6, %c0_7] : memref<4x256xf32, #tpu.memory_space<vmem>>, vector<4x256xf32>
    tpu.vector_store %arg3[%c0_6, %c0_7], %7 {strides = array<i32>} : memref<4x256xf32, #tpu.memory_space<vmem>>, vector<4x256xf32>,
    return
  }
}

module attributes {stable_mosaic.version = 11 : i64} {
  func.func @_fused_lstm_ae_kernel(%arg0: memref<16x64xf32, #tpu.memory_space<vmem>>, %arg1: memref<64x128xf32, #tpu.memory_space<vmem>>, %arg2: memref<32x128xf32, #tpu.memory_space<vmem>>, %arg3: memref<1x128xf32, #tpu.memory_space<vmem>>, %arg4: memref<32x128xf32, #tpu.memory_space<vmem>>, %arg5: memref<32x128xf32, #tpu.memory_space<vmem>>, %arg6: memref<1x128xf32, #tpu.memory_space<vmem>>, %arg7: memref<32x64xf32, #tpu.memory_space<vmem>>, %arg8: memref<1x64xf32, #tpu.memory_space<vmem>>, %arg9: memref<16x64xf32, #tpu.memory_space<vmem>>, %arg10: memref<16x32xf32, #tpu.memory_space<vmem>>) attributes {dimension_semantics = [], scalar_prefetch = 0 : i64, scratch_operands = 1 : i64, tpu.core_type = #tpu.core_type<tc>} {
    %c0 = arith.constant 0 : index
    %c0_0 = arith.constant 0 : index
    %0 = vector.load %arg0[%c0, %c0_0] : memref<16x64xf32, #tpu.memory_space<vmem>>, vector<16x64xf32>
    %c0_1 = arith.constant 0 : index
    %c0_2 = arith.constant 0 : index
    %1 = vector.load %arg1[%c0_1, %c0_2] : memref<64x128xf32, #tpu.memory_space<vmem>>, vector<64x128xf32>
    %cst = arith.constant dense<0.000000e+00> : vector<16x128xf32>
    %2 = tpu.matmul %0, %1, %cst {dimension_numbers = #tpu.dot_dimension_numbers<[1], [0], [0], [1], [0, 0, 1, 1], [], []>} : vector<16x64xf32>, vector<64x128xf32>, vector<16x128xf32> -> vector<16x128xf32>
    %c0_3 = arith.constant 0 : index
    %c0_4 = arith.constant 0 : index
    %3 = vector.load %arg3[%c0_3, %c0_4] : memref<1x128xf32, #tpu.memory_space<vmem>>, vector<1x128xf32>
    %4 = vector.broadcast %3 : vector<1x128xf32> to vector<16x128xf32>
    %5 = arith.addf %2, %4 : vector<16x128xf32>
    %c0_5 = arith.constant 0 : index
    %c0_6 = arith.constant 0 : index
    %6 = vector.load %arg2[%c0_5, %c0_6] : memref<32x128xf32, #tpu.memory_space<vmem>>, vector<32x128xf32>
    %cst_7 = arith.constant 0.000000e+00 : f32
    %7 = vector.broadcast %cst_7 : f32 to vector<2x32xf32>
    %cst_8 = arith.constant 0.000000e+00 : f32
    %8 = vector.broadcast %cst_8 : f32 to vector<2x32xf32>
    %9 = vector.extract_strided_slice %5 {offsets = [0, 0], sizes = [2, 128], strides = [1, 1]} : vector<16x128xf32> to vector<2x128xf32>
    %cst_9 = arith.constant dense<0.000000e+00> : vector<2x128xf32>
    %10 = tpu.matmul %7, %6, %cst_9 {dimension_numbers = #tpu.dot_dimension_numbers<[1], [0], [0], [1], [0, 0, 1, 1], [], []>} : vector<2x32xf32>, vector<32x128xf32>, vector<2x128xf32> -> vector<2x128xf32>
    %11 = arith.addf %9, %10 : vector<2x128xf32>
    %12 = arith.negf %11 : vector<2x128xf32>
    %13 = math.exp %12 : vector<2x128xf32>
    %cst_10 = arith.constant 1.000000e+00 : f32
    %14 = vector.broadcast %cst_10 : f32 to vector<2x128xf32>
    %15 = arith.addf %14, %13 : vector<2x128xf32>
    %16 = arith.divf %14, %15 : vector<2x128xf32>
    %17 = math.tanh %11 : vector<2x128xf32>
    %18 = vector.extract_strided_slice %16 {offsets = [0, 0], sizes = [2, 32], strides = [1, 1]} : vector<2x128xf32> to vector<2x32xf32>
    %19 = vector.extract_strided_slice %16 {offsets = [0, 32], sizes = [2, 32], strides = [1, 1]} : vector<2x128xf32> to vector<2x32xf32>
    %20 = vector.extract_strided_slice %17 {offsets = [0, 64], sizes = [2, 32], strides = [1, 1]} : vector<2x128xf32> to vector<2x32xf32>
    %21 = vector.extract_strided_slice %16 {offsets = [0, 96], sizes = [2, 32], strides = [1, 1]} : vector<2x128xf32> to vector<2x32xf32>
    %22 = arith.mulf %19, %8 : vector<2x32xf32>
    %23 = arith.mulf %18, %20 : vector<2x32xf32>
    %24 = arith.addf %22, %23 : vector<2x32xf32>
    %25 = math.tanh %24 : vector<2x32xf32>
    %26 = arith.mulf %21, %25 : vector<2x32xf32>
    %27 = vector.extract_strided_slice %5 {offsets = [2, 0], sizes = [2, 128], strides = [1, 1]} : vector<16x128xf32> to vector<2x128xf32>
    %cst_11 = arith.constant dense<0.000000e+00> : vector<2x128xf32>
    %28 = tpu.matmul %26, %6, %cst_11 {dimension_numbers = #tpu.dot_dimension_numbers<[1], [0], [0], [1], [0, 0, 1, 1], [], []>} : vector<2x32xf32>, vector<32x128xf32>, vector<2x128xf32> -> vector<2x128xf32>
    %29 = arith.addf %27, %28 : vector<2x128xf32>
    %30 = arith.negf %29 : vector<2x128xf32>
    %31 = math.exp %30 : vector<2x128xf32>
    %cst_12 = arith.constant 1.000000e+00 : f32
    %32 = vector.broadcast %cst_12 : f32 to vector<2x128xf32>
    %33 = arith.addf %32, %31 : vector<2x128xf32>
    %34 = arith.divf %32, %33 : vector<2x128xf32>
    %35 = math.tanh %29 : vector<2x128xf32>
    %36 = vector.extract_strided_slice %34 {offsets = [0, 0], sizes = [2, 32], strides = [1, 1]} : vector<2x128xf32> to vector<2x32xf32>
    %37 = vector.extract_strided_slice %34 {offsets = [0, 32], sizes = [2, 32], strides = [1, 1]} : vector<2x128xf32> to vector<2x32xf32>
    %38 = vector.extract_strided_slice %35 {offsets = [0, 64], sizes = [2, 32], strides = [1, 1]} : vector<2x128xf32> to vector<2x32xf32>
    %39 = vector.extract_strided_slice %34 {offsets = [0, 96], sizes = [2, 32], strides = [1, 1]} : vector<2x128xf32> to vector<2x32xf32>
    %40 = arith.mulf %37, %24 : vector<2x32xf32>
    %41 = arith.mulf %36, %38 : vector<2x32xf32>
    %42 = arith.addf %40, %41 : vector<2x32xf32>
    %43 = math.tanh %42 : vector<2x32xf32>
    %44 = arith.mulf %39, %43 : vector<2x32xf32>
    %45 = vector.extract_strided_slice %5 {offsets = [4, 0], sizes = [2, 128], strides = [1, 1]} : vector<16x128xf32> to vector<2x128xf32>
    %cst_13 = arith.constant dense<0.000000e+00> : vector<2x128xf32>
    %46 = tpu.matmul %44, %6, %cst_13 {dimension_numbers = #tpu.dot_dimension_numbers<[1], [0], [0], [1], [0, 0, 1, 1], [], []>} : vector<2x32xf32>, vector<32x128xf32>, vector<2x128xf32> -> vector<2x128xf32>
    %47 = arith.addf %45, %46 : vector<2x128xf32>
    %48 = arith.negf %47 : vector<2x128xf32>
    %49 = math.exp %48 : vector<2x128xf32>
    %cst_14 = arith.constant 1.000000e+00 : f32
    %50 = vector.broadcast %cst_14 : f32 to vector<2x128xf32>
    %51 = arith.addf %50, %49 : vector<2x128xf32>
    %52 = arith.divf %50, %51 : vector<2x128xf32>
    %53 = math.tanh %47 : vector<2x128xf32>
    %54 = vector.extract_strided_slice %52 {offsets = [0, 0], sizes = [2, 32], strides = [1, 1]} : vector<2x128xf32> to vector<2x32xf32>
    %55 = vector.extract_strided_slice %52 {offsets = [0, 32], sizes = [2, 32], strides = [1, 1]} : vector<2x128xf32> to vector<2x32xf32>
    %56 = vector.extract_strided_slice %53 {offsets = [0, 64], sizes = [2, 32], strides = [1, 1]} : vector<2x128xf32> to vector<2x32xf32>
    %57 = vector.extract_strided_slice %52 {offsets = [0, 96], sizes = [2, 32], strides = [1, 1]} : vector<2x128xf32> to vector<2x32xf32>
    %58 = arith.mulf %55, %42 : vector<2x32xf32>
    %59 = arith.mulf %54, %56 : vector<2x32xf32>
    %60 = arith.addf %58, %59 : vector<2x32xf32>
    %61 = math.tanh %60 : vector<2x32xf32>
    %62 = arith.mulf %57, %61 : vector<2x32xf32>
    %63 = vector.extract_strided_slice %5 {offsets = [6, 0], sizes = [2, 128], strides = [1, 1]} : vector<16x128xf32> to vector<2x128xf32>
    %cst_15 = arith.constant dense<0.000000e+00> : vector<2x128xf32>
    %64 = tpu.matmul %62, %6, %cst_15 {dimension_numbers = #tpu.dot_dimension_numbers<[1], [0], [0], [1], [0, 0, 1, 1], [], []>} : vector<2x32xf32>, vector<32x128xf32>, vector<2x128xf32> -> vector<2x128xf32>
    %65 = arith.addf %63, %64 : vector<2x128xf32>
    %66 = arith.negf %65 : vector<2x128xf32>
    %67 = math.exp %66 : vector<2x128xf32>
    %cst_16 = arith.constant 1.000000e+00 : f32
    %68 = vector.broadcast %cst_16 : f32 to vector<2x128xf32>
    %69 = arith.addf %68, %67 : vector<2x128xf32>
    %70 = arith.divf %68, %69 : vector<2x128xf32>
    %71 = math.tanh %65 : vector<2x128xf32>
    %72 = vector.extract_strided_slice %70 {offsets = [0, 0], sizes = [2, 32], strides = [1, 1]} : vector<2x128xf32> to vector<2x32xf32>
    %73 = vector.extract_strided_slice %70 {offsets = [0, 32], sizes = [2, 32], strides = [1, 1]} : vector<2x128xf32> to vector<2x32xf32>
    %74 = vector.extract_strided_slice %71 {offsets = [0, 64], sizes = [2, 32], strides = [1, 1]} : vector<2x128xf32> to vector<2x32xf32>
    %75 = vector.extract_strided_slice %70 {offsets = [0, 96], sizes = [2, 32], strides = [1, 1]} : vector<2x128xf32> to vector<2x32xf32>
    %76 = arith.mulf %73, %60 : vector<2x32xf32>
    %77 = arith.mulf %72, %74 : vector<2x32xf32>
    %78 = arith.addf %76, %77 : vector<2x32xf32>
    %79 = math.tanh %78 : vector<2x32xf32>
    %80 = arith.mulf %75, %79 : vector<2x32xf32>
    %81 = vector.extract_strided_slice %5 {offsets = [8, 0], sizes = [2, 128], strides = [1, 1]} : vector<16x128xf32> to vector<2x128xf32>
    %cst_17 = arith.constant dense<0.000000e+00> : vector<2x128xf32>
    %82 = tpu.matmul %80, %6, %cst_17 {dimension_numbers = #tpu.dot_dimension_numbers<[1], [0], [0], [1], [0, 0, 1, 1], [], []>} : vector<2x32xf32>, vector<32x128xf32>, vector<2x128xf32> -> vector<2x128xf32>
    %83 = arith.addf %81, %82 : vector<2x128xf32>
    %84 = arith.negf %83 : vector<2x128xf32>
    %85 = math.exp %84 : vector<2x128xf32>
    %cst_18 = arith.constant 1.000000e+00 : f32
    %86 = vector.broadcast %cst_18 : f32 to vector<2x128xf32>
    %87 = arith.addf %86, %85 : vector<2x128xf32>
    %88 = arith.divf %86, %87 : vector<2x128xf32>
    %89 = math.tanh %83 : vector<2x128xf32>
    %90 = vector.extract_strided_slice %88 {offsets = [0, 0], sizes = [2, 32], strides = [1, 1]} : vector<2x128xf32> to vector<2x32xf32>
    %91 = vector.extract_strided_slice %88 {offsets = [0, 32], sizes = [2, 32], strides = [1, 1]} : vector<2x128xf32> to vector<2x32xf32>
    %92 = vector.extract_strided_slice %89 {offsets = [0, 64], sizes = [2, 32], strides = [1, 1]} : vector<2x128xf32> to vector<2x32xf32>
    %93 = vector.extract_strided_slice %88 {offsets = [0, 96], sizes = [2, 32], strides = [1, 1]} : vector<2x128xf32> to vector<2x32xf32>
    %94 = arith.mulf %91, %78 : vector<2x32xf32>
    %95 = arith.mulf %90, %92 : vector<2x32xf32>
    %96 = arith.addf %94, %95 : vector<2x32xf32>
    %97 = math.tanh %96 : vector<2x32xf32>
    %98 = arith.mulf %93, %97 : vector<2x32xf32>
    %99 = vector.extract_strided_slice %5 {offsets = [10, 0], sizes = [2, 128], strides = [1, 1]} : vector<16x128xf32> to vector<2x128xf32>
    %cst_19 = arith.constant dense<0.000000e+00> : vector<2x128xf32>
    %100 = tpu.matmul %98, %6, %cst_19 {dimension_numbers = #tpu.dot_dimension_numbers<[1], [0], [0], [1], [0, 0, 1, 1], [], []>} : vector<2x32xf32>, vector<32x128xf32>, vector<2x128xf32> -> vector<2x128xf32>
    %101 = arith.addf %99, %100 : vector<2x128xf32>
    %102 = arith.negf %101 : vector<2x128xf32>
    %103 = math.exp %102 : vector<2x128xf32>
    %cst_20 = arith.constant 1.000000e+00 : f32
    %104 = vector.broadcast %cst_20 : f32 to vector<2x128xf32>
    %105 = arith.addf %104, %103 : vector<2x128xf32>
    %106 = arith.divf %104, %105 : vector<2x128xf32>
    %107 = math.tanh %101 : vector<2x128xf32>
    %108 = vector.extract_strided_slice %106 {offsets = [0, 0], sizes = [2, 32], strides = [1, 1]} : vector<2x128xf32> to vector<2x32xf32>
    %109 = vector.extract_strided_slice %106 {offsets = [0, 32], sizes = [2, 32], strides = [1, 1]} : vector<2x128xf32> to vector<2x32xf32>
    %110 = vector.extract_strided_slice %107 {offsets = [0, 64], sizes = [2, 32], strides = [1, 1]} : vector<2x128xf32> to vector<2x32xf32>
    %111 = vector.extract_strided_slice %106 {offsets = [0, 96], sizes = [2, 32], strides = [1, 1]} : vector<2x128xf32> to vector<2x32xf32>
    %112 = arith.mulf %109, %96 : vector<2x32xf32>
    %113 = arith.mulf %108, %110 : vector<2x32xf32>
    %114 = arith.addf %112, %113 : vector<2x32xf32>
    %115 = math.tanh %114 : vector<2x32xf32>
    %116 = arith.mulf %111, %115 : vector<2x32xf32>
    %117 = vector.extract_strided_slice %5 {offsets = [12, 0], sizes = [2, 128], strides = [1, 1]} : vector<16x128xf32> to vector<2x128xf32>
    %cst_21 = arith.constant dense<0.000000e+00> : vector<2x128xf32>
    %118 = tpu.matmul %116, %6, %cst_21 {dimension_numbers = #tpu.dot_dimension_numbers<[1], [0], [0], [1], [0, 0, 1, 1], [], []>} : vector<2x32xf32>, vector<32x128xf32>, vector<2x128xf32> -> vector<2x128xf32>
    %119 = arith.addf %117, %118 : vector<2x128xf32>
    %120 = arith.negf %119 : vector<2x128xf32>
    %121 = math.exp %120 : vector<2x128xf32>
    %cst_22 = arith.constant 1.000000e+00 : f32
    %122 = vector.broadcast %cst_22 : f32 to vector<2x128xf32>
    %123 = arith.addf %122, %121 : vector<2x128xf32>
    %124 = arith.divf %122, %123 : vector<2x128xf32>
    %125 = math.tanh %119 : vector<2x128xf32>
    %126 = vector.extract_strided_slice %124 {offsets = [0, 0], sizes = [2, 32], strides = [1, 1]} : vector<2x128xf32> to vector<2x32xf32>
    %127 = vector.extract_strided_slice %124 {offsets = [0, 32], sizes = [2, 32], strides = [1, 1]} : vector<2x128xf32> to vector<2x32xf32>
    %128 = vector.extract_strided_slice %125 {offsets = [0, 64], sizes = [2, 32], strides = [1, 1]} : vector<2x128xf32> to vector<2x32xf32>
    %129 = vector.extract_strided_slice %124 {offsets = [0, 96], sizes = [2, 32], strides = [1, 1]} : vector<2x128xf32> to vector<2x32xf32>
    %130 = arith.mulf %127, %114 : vector<2x32xf32>
    %131 = arith.mulf %126, %128 : vector<2x32xf32>
    %132 = arith.addf %130, %131 : vector<2x32xf32>
    %133 = math.tanh %132 : vector<2x32xf32>
    %134 = arith.mulf %129, %133 : vector<2x32xf32>
    %135 = vector.extract_strided_slice %5 {offsets = [14, 0], sizes = [2, 128], strides = [1, 1]} : vector<16x128xf32> to vector<2x128xf32>
    %cst_23 = arith.constant dense<0.000000e+00> : vector<2x128xf32>
    %136 = tpu.matmul %134, %6, %cst_23 {dimension_numbers = #tpu.dot_dimension_numbers<[1], [0], [0], [1], [0, 0, 1, 1], [], []>} : vector<2x32xf32>, vector<32x128xf32>, vector<2x128xf32> -> vector<2x128xf32>
    %137 = arith.addf %135, %136 : vector<2x128xf32>
    %138 = arith.negf %137 : vector<2x128xf32>
    %139 = math.exp %138 : vector<2x128xf32>
    %cst_24 = arith.constant 1.000000e+00 : f32
    %140 = vector.broadcast %cst_24 : f32 to vector<2x128xf32>
    %141 = arith.addf %140, %139 : vector<2x128xf32>
    %142 = arith.divf %140, %141 : vector<2x128xf32>
    %143 = math.tanh %137 : vector<2x128xf32>
    %144 = vector.extract_strided_slice %142 {offsets = [0, 0], sizes = [2, 32], strides = [1, 1]} : vector<2x128xf32> to vector<2x32xf32>
    %145 = vector.extract_strided_slice %142 {offsets = [0, 32], sizes = [2, 32], strides = [1, 1]} : vector<2x128xf32> to vector<2x32xf32>
    %146 = vector.extract_strided_slice %143 {offsets = [0, 64], sizes = [2, 32], strides = [1, 1]} : vector<2x128xf32> to vector<2x32xf32>
    %147 = vector.extract_strided_slice %142 {offsets = [0, 96], sizes = [2, 32], strides = [1, 1]} : vector<2x128xf32> to vector<2x32xf32>
    %148 = arith.mulf %145, %132 : vector<2x32xf32>
    %149 = arith.mulf %144, %146 : vector<2x32xf32>
    %150 = arith.addf %148, %149 : vector<2x32xf32>
    %151 = math.tanh %150 : vector<2x32xf32>
    %152 = arith.mulf %147, %151 : vector<2x32xf32>
    %c0_25 = arith.constant 0 : index
    %c0_26 = arith.constant 0 : index
    %153 = vector.load %arg4[%c0_25, %c0_26] : memref<32x128xf32, #tpu.memory_space<vmem>>, vector<32x128xf32>
    %cst_27 = arith.constant dense<0.000000e+00> : vector<2x128xf32>
    %154 = tpu.matmul %152, %153, %cst_27 {dimension_numbers = #tpu.dot_dimension_numbers<[1], [0], [0], [1], [0, 0, 1, 1], [], []>} : vector<2x32xf32>, vector<32x128xf32>, vector<2x128xf32> -> vector<2x128xf32>
    %c0_28 = arith.constant 0 : index
    %c0_29 = arith.constant 0 : index
    %155 = vector.load %arg6[%c0_28, %c0_29] : memref<1x128xf32, #tpu.memory_space<vmem>>, vector<1x128xf32>
    %156 = vector.broadcast %155 : vector<1x128xf32> to vector<2x128xf32>
    %157 = arith.addf %154, %156 : vector<2x128xf32>
    %c0_30 = arith.constant 0 : index
    %c0_31 = arith.constant 0 : index
    %158 = vector.load %arg5[%c0_30, %c0_31] : memref<32x128xf32, #tpu.memory_space<vmem>>, vector<32x128xf32>
    %cst_32 = arith.constant 0.000000e+00 : f32
    %159 = vector.broadcast %cst_32 : f32 to vector<2x32xf32>
    %cst_33 = arith.constant 0.000000e+00 : f32
    %160 = vector.broadcast %cst_33 : f32 to vector<2x32xf32>
    %cst_34 = arith.constant dense<0.000000e+00> : vector<2x128xf32>
    %161 = tpu.matmul %159, %158, %cst_34 {dimension_numbers = #tpu.dot_dimension_numbers<[1], [0], [0], [1], [0, 0, 1, 1], [], []>} : vector<2x32xf32>, vector<32x128xf32>, vector<2x128xf32> -> vector<2x128xf32>
    %162 = arith.addf %157, %161 : vector<2x128xf32>
    %163 = arith.negf %162 : vector<2x128xf32>
    %164 = math.exp %163 : vector<2x128xf32>
    %cst_35 = arith.constant 1.000000e+00 : f32
    %165 = vector.broadcast %cst_35 : f32 to vector<2x128xf32>
    %166 = arith.addf %165, %164 : vector<2x128xf32>
    %167 = arith.divf %165, %166 : vector<2x128xf32>
    %168 = math.tanh %162 : vector<2x128xf32>
    %169 = vector.extract_strided_slice %167 {offsets = [0, 0], sizes = [2, 32], strides = [1, 1]} : vector<2x128xf32> to vector<2x32xf32>
    %170 = vector.extract_strided_slice %167 {offsets = [0, 32], sizes = [2, 32], strides = [1, 1]} : vector<2x128xf32> to vector<2x32xf32>
    %171 = vector.extract_strided_slice %168 {offsets = [0, 64], sizes = [2, 32], strides = [1, 1]} : vector<2x128xf32> to vector<2x32xf32>
    %172 = vector.extract_strided_slice %167 {offsets = [0, 96], sizes = [2, 32], strides = [1, 1]} : vector<2x128xf32> to vector<2x32xf32>
    %173 = arith.mulf %170, %160 : vector<2x32xf32>
    %174 = arith.mulf %169, %171 : vector<2x32xf32>
    %175 = arith.addf %173, %174 : vector<2x32xf32>
    %176 = math.tanh %175 : vector<2x32xf32>
    %177 = arith.mulf %172, %176 : vector<2x32xf32>
    %c0_36 = arith.constant 0 : index
    %c0_37 = arith.constant 0 : index
    %178 = vector.load %arg10[%c0_36, %c0_37] : memref<16x32xf32, #tpu.memory_space<vmem>>, vector<2x32xf32>
    tpu.vector_store %arg10[%c0_36, %c0_37], %177 {strides = array<i32>} : memref<16x32xf32, #tpu.memory_space<vmem>>, vector<2x32xf32>,
    %cst_38 = arith.constant dense<0.000000e+00> : vector<2x128xf32>
    %179 = tpu.matmul %177, %158, %cst_38 {dimension_numbers = #tpu.dot_dimension_numbers<[1], [0], [0], [1], [0, 0, 1, 1], [], []>} : vector<2x32xf32>, vector<32x128xf32>, vector<2x128xf32> -> vector<2x128xf32>
    %180 = arith.addf %157, %179 : vector<2x128xf32>
    %181 = arith.negf %180 : vector<2x128xf32>
    %182 = math.exp %181 : vector<2x128xf32>
    %cst_39 = arith.constant 1.000000e+00 : f32
    %183 = vector.broadcast %cst_39 : f32 to vector<2x128xf32>
    %184 = arith.addf %183, %182 : vector<2x128xf32>
    %185 = arith.divf %183, %184 : vector<2x128xf32>
    %186 = math.tanh %180 : vector<2x128xf32>
    %187 = vector.extract_strided_slice %185 {offsets = [0, 0], sizes = [2, 32], strides = [1, 1]} : vector<2x128xf32> to vector<2x32xf32>
    %188 = vector.extract_strided_slice %185 {offsets = [0, 32], sizes = [2, 32], strides = [1, 1]} : vector<2x128xf32> to vector<2x32xf32>
    %189 = vector.extract_strided_slice %186 {offsets = [0, 64], sizes = [2, 32], strides = [1, 1]} : vector<2x128xf32> to vector<2x32xf32>
    %190 = vector.extract_strided_slice %185 {offsets = [0, 96], sizes = [2, 32], strides = [1, 1]} : vector<2x128xf32> to vector<2x32xf32>
    %191 = arith.mulf %188, %175 : vector<2x32xf32>
    %192 = arith.mulf %187, %189 : vector<2x32xf32>
    %193 = arith.addf %191, %192 : vector<2x32xf32>
    %194 = math.tanh %193 : vector<2x32xf32>
    %195 = arith.mulf %190, %194 : vector<2x32xf32>
    %c2 = arith.constant 2 : index
    %c0_40 = arith.constant 0 : index
    %196 = vector.load %arg10[%c2, %c0_40] : memref<16x32xf32, #tpu.memory_space<vmem>>, vector<2x32xf32>
    tpu.vector_store %arg10[%c2, %c0_40], %195 {strides = array<i32>} : memref<16x32xf32, #tpu.memory_space<vmem>>, vector<2x32xf32>,
    %cst_41 = arith.constant dense<0.000000e+00> : vector<2x128xf32>
    %197 = tpu.matmul %195, %158, %cst_41 {dimension_numbers = #tpu.dot_dimension_numbers<[1], [0], [0], [1], [0, 0, 1, 1], [], []>} : vector<2x32xf32>, vector<32x128xf32>, vector<2x128xf32> -> vector<2x128xf32>
    %198 = arith.addf %157, %197 : vector<2x128xf32>
    %199 = arith.negf %198 : vector<2x128xf32>
    %200 = math.exp %199 : vector<2x128xf32>
    %cst_42 = arith.constant 1.000000e+00 : f32
    %201 = vector.broadcast %cst_42 : f32 to vector<2x128xf32>
    %202 = arith.addf %201, %200 : vector<2x128xf32>
    %203 = arith.divf %201, %202 : vector<2x128xf32>
    %204 = math.tanh %198 : vector<2x128xf32>
    %205 = vector.extract_strided_slice %203 {offsets = [0, 0], sizes = [2, 32], strides = [1, 1]} : vector<2x128xf32> to vector<2x32xf32>
    %206 = vector.extract_strided_slice %203 {offsets = [0, 32], sizes = [2, 32], strides = [1, 1]} : vector<2x128xf32> to vector<2x32xf32>
    %207 = vector.extract_strided_slice %204 {offsets = [0, 64], sizes = [2, 32], strides = [1, 1]} : vector<2x128xf32> to vector<2x32xf32>
    %208 = vector.extract_strided_slice %203 {offsets = [0, 96], sizes = [2, 32], strides = [1, 1]} : vector<2x128xf32> to vector<2x32xf32>
    %209 = arith.mulf %206, %193 : vector<2x32xf32>
    %210 = arith.mulf %205, %207 : vector<2x32xf32>
    %211 = arith.addf %209, %210 : vector<2x32xf32>
    %212 = math.tanh %211 : vector<2x32xf32>
    %213 = arith.mulf %208, %212 : vector<2x32xf32>
    %c4 = arith.constant 4 : index
    %c0_43 = arith.constant 0 : index
    %214 = vector.load %arg10[%c4, %c0_43] : memref<16x32xf32, #tpu.memory_space<vmem>>, vector<2x32xf32>
    tpu.vector_store %arg10[%c4, %c0_43], %213 {strides = array<i32>} : memref<16x32xf32, #tpu.memory_space<vmem>>, vector<2x32xf32>,
    %cst_44 = arith.constant dense<0.000000e+00> : vector<2x128xf32>
    %215 = tpu.matmul %213, %158, %cst_44 {dimension_numbers = #tpu.dot_dimension_numbers<[1], [0], [0], [1], [0, 0, 1, 1], [], []>} : vector<2x32xf32>, vector<32x128xf32>, vector<2x128xf32> -> vector<2x128xf32>
    %216 = arith.addf %157, %215 : vector<2x128xf32>
    %217 = arith.negf %216 : vector<2x128xf32>
    %218 = math.exp %217 : vector<2x128xf32>
    %cst_45 = arith.constant 1.000000e+00 : f32
    %219 = vector.broadcast %cst_45 : f32 to vector<2x128xf32>
    %220 = arith.addf %219, %218 : vector<2x128xf32>
    %221 = arith.divf %219, %220 : vector<2x128xf32>
    %222 = math.tanh %216 : vector<2x128xf32>
    %223 = vector.extract_strided_slice %221 {offsets = [0, 0], sizes = [2, 32], strides = [1, 1]} : vector<2x128xf32> to vector<2x32xf32>
    %224 = vector.extract_strided_slice %221 {offsets = [0, 32], sizes = [2, 32], strides = [1, 1]} : vector<2x128xf32> to vector<2x32xf32>
    %225 = vector.extract_strided_slice %222 {offsets = [0, 64], sizes = [2, 32], strides = [1, 1]} : vector<2x128xf32> to vector<2x32xf32>
    %226 = vector.extract_strided_slice %221 {offsets = [0, 96], sizes = [2, 32], strides = [1, 1]} : vector<2x128xf32> to vector<2x32xf32>
    %227 = arith.mulf %224, %211 : vector<2x32xf32>
    %228 = arith.mulf %223, %225 : vector<2x32xf32>
    %229 = arith.addf %227, %228 : vector<2x32xf32>
    %230 = math.tanh %229 : vector<2x32xf32>
    %231 = arith.mulf %226, %230 : vector<2x32xf32>
    %c6 = arith.constant 6 : index
    %c0_46 = arith.constant 0 : index
    %232 = vector.load %arg10[%c6, %c0_46] : memref<16x32xf32, #tpu.memory_space<vmem>>, vector<2x32xf32>
    tpu.vector_store %arg10[%c6, %c0_46], %231 {strides = array<i32>} : memref<16x32xf32, #tpu.memory_space<vmem>>, vector<2x32xf32>,
    %cst_47 = arith.constant dense<0.000000e+00> : vector<2x128xf32>
    %233 = tpu.matmul %231, %158, %cst_47 {dimension_numbers = #tpu.dot_dimension_numbers<[1], [0], [0], [1], [0, 0, 1, 1], [], []>} : vector<2x32xf32>, vector<32x128xf32>, vector<2x128xf32> -> vector<2x128xf32>
    %234 = arith.addf %157, %233 : vector<2x128xf32>
    %235 = arith.negf %234 : vector<2x128xf32>
    %236 = math.exp %235 : vector<2x128xf32>
    %cst_48 = arith.constant 1.000000e+00 : f32
    %237 = vector.broadcast %cst_48 : f32 to vector<2x128xf32>
    %238 = arith.addf %237, %236 : vector<2x128xf32>
    %239 = arith.divf %237, %238 : vector<2x128xf32>
    %240 = math.tanh %234 : vector<2x128xf32>
    %241 = vector.extract_strided_slice %239 {offsets = [0, 0], sizes = [2, 32], strides = [1, 1]} : vector<2x128xf32> to vector<2x32xf32>
    %242 = vector.extract_strided_slice %239 {offsets = [0, 32], sizes = [2, 32], strides = [1, 1]} : vector<2x128xf32> to vector<2x32xf32>
    %243 = vector.extract_strided_slice %240 {offsets = [0, 64], sizes = [2, 32], strides = [1, 1]} : vector<2x128xf32> to vector<2x32xf32>
    %244 = vector.extract_strided_slice %239 {offsets = [0, 96], sizes = [2, 32], strides = [1, 1]} : vector<2x128xf32> to vector<2x32xf32>
    %245 = arith.mulf %242, %229 : vector<2x32xf32>
    %246 = arith.mulf %241, %243 : vector<2x32xf32>
    %247 = arith.addf %245, %246 : vector<2x32xf32>
    %248 = math.tanh %247 : vector<2x32xf32>
    %249 = arith.mulf %244, %248 : vector<2x32xf32>
    %c8 = arith.constant 8 : index
    %c0_49 = arith.constant 0 : index
    %250 = vector.load %arg10[%c8, %c0_49] : memref<16x32xf32, #tpu.memory_space<vmem>>, vector<2x32xf32>
    tpu.vector_store %arg10[%c8, %c0_49], %249 {strides = array<i32>} : memref<16x32xf32, #tpu.memory_space<vmem>>, vector<2x32xf32>,
    %cst_50 = arith.constant dense<0.000000e+00> : vector<2x128xf32>
    %251 = tpu.matmul %249, %158, %cst_50 {dimension_numbers = #tpu.dot_dimension_numbers<[1], [0], [0], [1], [0, 0, 1, 1], [], []>} : vector<2x32xf32>, vector<32x128xf32>, vector<2x128xf32> -> vector<2x128xf32>
    %252 = arith.addf %157, %251 : vector<2x128xf32>
    %253 = arith.negf %252 : vector<2x128xf32>
    %254 = math.exp %253 : vector<2x128xf32>
    %cst_51 = arith.constant 1.000000e+00 : f32
    %255 = vector.broadcast %cst_51 : f32 to vector<2x128xf32>
    %256 = arith.addf %255, %254 : vector<2x128xf32>
    %257 = arith.divf %255, %256 : vector<2x128xf32>
    %258 = math.tanh %252 : vector<2x128xf32>
    %259 = vector.extract_strided_slice %257 {offsets = [0, 0], sizes = [2, 32], strides = [1, 1]} : vector<2x128xf32> to vector<2x32xf32>
    %260 = vector.extract_strided_slice %257 {offsets = [0, 32], sizes = [2, 32], strides = [1, 1]} : vector<2x128xf32> to vector<2x32xf32>
    %261 = vector.extract_strided_slice %258 {offsets = [0, 64], sizes = [2, 32], strides = [1, 1]} : vector<2x128xf32> to vector<2x32xf32>
    %262 = vector.extract_strided_slice %257 {offsets = [0, 96], sizes = [2, 32], strides = [1, 1]} : vector<2x128xf32> to vector<2x32xf32>
    %263 = arith.mulf %260, %247 : vector<2x32xf32>
    %264 = arith.mulf %259, %261 : vector<2x32xf32>
    %265 = arith.addf %263, %264 : vector<2x32xf32>
    %266 = math.tanh %265 : vector<2x32xf32>
    %267 = arith.mulf %262, %266 : vector<2x32xf32>
    %c10 = arith.constant 10 : index
    %c0_52 = arith.constant 0 : index
    %268 = vector.load %arg10[%c10, %c0_52] : memref<16x32xf32, #tpu.memory_space<vmem>>, vector<2x32xf32>
    tpu.vector_store %arg10[%c10, %c0_52], %267 {strides = array<i32>} : memref<16x32xf32, #tpu.memory_space<vmem>>, vector<2x32xf32>,
    %cst_53 = arith.constant dense<0.000000e+00> : vector<2x128xf32>
    %269 = tpu.matmul %267, %158, %cst_53 {dimension_numbers = #tpu.dot_dimension_numbers<[1], [0], [0], [1], [0, 0, 1, 1], [], []>} : vector<2x32xf32>, vector<32x128xf32>, vector<2x128xf32> -> vector<2x128xf32>
    %270 = arith.addf %157, %269 : vector<2x128xf32>
    %271 = arith.negf %270 : vector<2x128xf32>
    %272 = math.exp %271 : vector<2x128xf32>
    %cst_54 = arith.constant 1.000000e+00 : f32
    %273 = vector.broadcast %cst_54 : f32 to vector<2x128xf32>
    %274 = arith.addf %273, %272 : vector<2x128xf32>
    %275 = arith.divf %273, %274 : vector<2x128xf32>
    %276 = math.tanh %270 : vector<2x128xf32>
    %277 = vector.extract_strided_slice %275 {offsets = [0, 0], sizes = [2, 32], strides = [1, 1]} : vector<2x128xf32> to vector<2x32xf32>
    %278 = vector.extract_strided_slice %275 {offsets = [0, 32], sizes = [2, 32], strides = [1, 1]} : vector<2x128xf32> to vector<2x32xf32>
    %279 = vector.extract_strided_slice %276 {offsets = [0, 64], sizes = [2, 32], strides = [1, 1]} : vector<2x128xf32> to vector<2x32xf32>
    %280 = vector.extract_strided_slice %275 {offsets = [0, 96], sizes = [2, 32], strides = [1, 1]} : vector<2x128xf32> to vector<2x32xf32>
    %281 = arith.mulf %278, %265 : vector<2x32xf32>
    %282 = arith.mulf %277, %279 : vector<2x32xf32>
    %283 = arith.addf %281, %282 : vector<2x32xf32>
    %284 = math.tanh %283 : vector<2x32xf32>
    %285 = arith.mulf %280, %284 : vector<2x32xf32>
    %c12 = arith.constant 12 : index
    %c0_55 = arith.constant 0 : index
    %286 = vector.load %arg10[%c12, %c0_55] : memref<16x32xf32, #tpu.memory_space<vmem>>, vector<2x32xf32>
    tpu.vector_store %arg10[%c12, %c0_55], %285 {strides = array<i32>} : memref<16x32xf32, #tpu.memory_space<vmem>>, vector<2x32xf32>,
    %cst_56 = arith.constant dense<0.000000e+00> : vector<2x128xf32>
    %287 = tpu.matmul %285, %158, %cst_56 {dimension_numbers = #tpu.dot_dimension_numbers<[1], [0], [0], [1], [0, 0, 1, 1], [], []>} : vector<2x32xf32>, vector<32x128xf32>, vector<2x128xf32> -> vector<2x128xf32>
    %288 = arith.addf %157, %287 : vector<2x128xf32>
    %289 = arith.negf %288 : vector<2x128xf32>
    %290 = math.exp %289 : vector<2x128xf32>
    %cst_57 = arith.constant 1.000000e+00 : f32
    %291 = vector.broadcast %cst_57 : f32 to vector<2x128xf32>
    %292 = arith.addf %291, %290 : vector<2x128xf32>
    %293 = arith.divf %291, %292 : vector<2x128xf32>
    %294 = math.tanh %288 : vector<2x128xf32>
    %295 = vector.extract_strided_slice %293 {offsets = [0, 0], sizes = [2, 32], strides = [1, 1]} : vector<2x128xf32> to vector<2x32xf32>
    %296 = vector.extract_strided_slice %293 {offsets = [0, 32], sizes = [2, 32], strides = [1, 1]} : vector<2x128xf32> to vector<2x32xf32>
    %297 = vector.extract_strided_slice %294 {offsets = [0, 64], sizes = [2, 32], strides = [1, 1]} : vector<2x128xf32> to vector<2x32xf32>
    %298 = vector.extract_strided_slice %293 {offsets = [0, 96], sizes = [2, 32], strides = [1, 1]} : vector<2x128xf32> to vector<2x32xf32>
    %299 = arith.mulf %296, %283 : vector<2x32xf32>
    %300 = arith.mulf %295, %297 : vector<2x32xf32>
    %301 = arith.addf %299, %300 : vector<2x32xf32>
    %302 = math.tanh %301 : vector<2x32xf32>
    %303 = arith.mulf %298, %302 : vector<2x32xf32>
    %c14 = arith.constant 14 : index
    %c0_58 = arith.constant 0 : index
    %304 = vector.load %arg10[%c14, %c0_58] : memref<16x32xf32, #tpu.memory_space<vmem>>, vector<2x32xf32>
    tpu.vector_store %arg10[%c14, %c0_58], %303 {strides = array<i32>} : memref<16x32xf32, #tpu.memory_space<vmem>>, vector<2x32xf32>,
    %c0_59 = arith.constant 0 : index
    %c0_60 = arith.constant 0 : index
    %305 = vector.load %arg10[%c0_59, %c0_60] : memref<16x32xf32, #tpu.memory_space<vmem>>, vector<16x32xf32>
    %c0_61 = arith.constant 0 : index
    %c0_62 = arith.constant 0 : index
    %306 = vector.load %arg7[%c0_61, %c0_62] : memref<32x64xf32, #tpu.memory_space<vmem>>, vector<32x64xf32>
    %cst_63 = arith.constant dense<0.000000e+00> : vector<16x64xf32>
    %307 = tpu.matmul %305, %306, %cst_63 {dimension_numbers = #tpu.dot_dimension_numbers<[1], [0], [0], [1], [0, 0, 1, 1], [], []>} : vector<16x32xf32>, vector<32x64xf32>, vector<16x64xf32> -> vector<16x64xf32>
    %c0_64 = arith.constant 0 : index
    %c0_65 = arith.constant 0 : index
    %308 = vector.load %arg8[%c0_64, %c0_65] : memref<1x64xf32, #tpu.memory_space<vmem>>, vector<1x64xf32>
    %309 = vector.broadcast %308 : vector<1x64xf32> to vector<16x64xf32>
    %310 = arith.addf %307, %309 : vector<16x64xf32>
    %c0_66 = arith.constant 0 : index
    %c0_67 = arith.constant 0 : index
    %311 = vector.load %arg9[%c0_66, %c0_67] : memref<16x64xf32, #tpu.memory_space<vmem>>, vector<16x64xf32>
    tpu.vector_store %arg9[%c0_66, %c0_67], %310 {strides = array<i32>} : memref<16x64xf32, #tpu.memory_space<vmem>>, vector<16x64xf32>,
    return
  }
}

module attributes {stable_mosaic.version = 11 : i64} {
  func.func @_matmul_bias_kernel(%arg0: memref<4x12xf32, #tpu.memory_space<vmem>>, %arg1: memref<12x256xf32, #tpu.memory_space<vmem>>, %arg2: memref<4x1xf32, #tpu.memory_space<vmem>>, %arg3: memref<4x256xf32, #tpu.memory_space<vmem>>) attributes {dimension_semantics = [], scalar_prefetch = 0 : i64, scratch_operands = 0 : i64, tpu.core_type = #tpu.core_type<tc>} {
    %c0 = arith.constant 0 : index
    %c0_0 = arith.constant 0 : index
    %0 = vector.load %arg0[%c0, %c0_0] : memref<4x12xf32, #tpu.memory_space<vmem>>, vector<4x12xf32>
    %c0_1 = arith.constant 0 : index
    %c0_2 = arith.constant 0 : index
    %1 = vector.load %arg1[%c0_1, %c0_2] : memref<12x256xf32, #tpu.memory_space<vmem>>, vector<12x256xf32>
    %cst = arith.constant dense<0.000000e+00> : vector<4x256xf32>
    %2 = tpu.matmul %0, %1, %cst {dimension_numbers = #tpu.dot_dimension_numbers<[1], [0], [0], [1], [0, 0, 1, 1], [], []>} : vector<4x12xf32>, vector<12x256xf32>, vector<4x256xf32> -> vector<4x256xf32>
    %c0_3 = arith.constant 0 : index
    %c0_4 = arith.constant 0 : index
    %3 = vector.load %arg2[%c0_3, %c0_4] : memref<4x1xf32, #tpu.memory_space<vmem>>, vector<4x1xf32>
    %4 = vector.broadcast %3 : vector<4x1xf32> to vector<4x256xf32>
    %5 = arith.addf %2, %4 : vector<4x256xf32>
    %c0_5 = arith.constant 0 : index
    %c0_6 = arith.constant 0 : index
    %6 = vector.load %arg3[%c0_5, %c0_6] : memref<4x256xf32, #tpu.memory_space<vmem>>, vector<4x256xf32>
    tpu.vector_store %arg3[%c0_5, %c0_6], %5 {strides = array<i32>} : memref<4x256xf32, #tpu.memory_space<vmem>>, vector<4x256xf32>,
    return
  }
}

</mosaic_0001>

<bundles_post_ra>
// kernel: autoencoder_forward.3
= control target key start
LH: loop header
LB: loop body
LE: loop exit
PB: predicated region body
PF: predicated region fallthrough
CT: control target
= control target key end

     0   :  { %vm29_vm0 = vcmask 1043456   ;;  %v124_v3 = vmov 0.0   ;;  %v125_v4 = vmov 0   ;;  %vm25_vm1 = vcmask 97280   ;;  %s167_s1 = inlined_call_operand.vmem [shape: f32[12,256], index: 1, kind: input, shape index: {}]   ;;  %s168_s0 = inlined_call_operand.vmem [shape: f32[4,12], index: 0, kind: input, shape index: {}]   ;;  %s169_s2 = inlined_call_operand.vmem [shape: f32[4,1], index: 2, kind: input, shape index: {}]   ;;  %s170_s3 = inlined_call_operand.vmem [shape: f32[4,256], index: 3, kind: output, shape index: {}]  }
   0x1   :  { %v18_v0 = vld [vmem:[%s167_s1 + $0x18] sm:$0xf]  ;;  %v17_v1 = vld [vmem:[%s167_s1 + $0x10] sm:$0xf]  ;;  %v16_v2 = vld [vmem:[%s167_s1 + $0x8] sm:$0xff]  ;;  %100 = vmatprep.mubr.f32.mxu0 %v124_v3  ;;  %123 = vset.pattern.permute.xlu0 %v125_v4 }
   0x2   :  { %118 = vmatprep.subr.msk.mxu0 %vm29_vm0, %v18_v0  ;;  %v15_v5 = vld [vmem:[%s167_s1] sm:$0xff] }
   0x3   :  { %v19_v6 = vld [vmem:[%s169_s2] sm:$0xf]  ;;  %119 = vmatpush1.msk.msra.mxu0 %vm29_vm0, %v17_v1 }
   0x4   :  { %v14_v7 = vld [vmem:[%s168_s0] sm:$0xf]  ;;  %22 = vperm.xlu0 %123, %v19_v6   ;;  %66 = vmatprep.subr.mxu0 %v16_v2 }
   0x5   :  { %67 = vmatpush1.msra.mxu0 %v15_v5 }
   0x6   :  { %120 = vmatmul.mubr.msk.f32.vlgmr.msra.gmra.mxu0 %vm25_vm1, %v14_v7 }
  0x7f   :  { %v23_v8 = vpop.permute.xlu0 %22 }
  0xc6   :  { %v102_v9 = vpop.f32.mrf.mxu0 }
  0xc7   :  { %v103_v10 = vadd.f32 %v102_v9, %v23_v8 }
  0xc8   :  { %v104_v11 = vpop.f32.mrf.mxu0 }
  0xc9   :  { %v105_v12 = vadd.f32 %v104_v11, %v23_v8  ;;  %v107_v13 = vmax.f32 %v103_v10, 0.0 }
  0xcb   :  { %v108_v14 = vmax.f32 %v105_v12, 0.0 }
  0xcd   :  { %v111_v15 = vcombine.low %v107_v13, %v108_v14 }
  0xcf   :  { %113 = vst [vmem:[%s170_s3] sm:$0xff] %v111_v15 }

// kernel: autoencoder_forward.5
= control target key start
LH: loop header
LB: loop body
LE: loop exit
PB: predicated region body
PF: predicated region fallthrough
CT: control target
= control target key end

     0   :  { %vm30_vm0 = vcmask 1043456   ;;  %v156_v5 = vmov 0.0   ;;  %vm26_vm1 = vcmask 97280   ;;  %s200_s0 = inlined_call_operand.vmem [shape: f32[4,12], index: 0, kind: input, shape index: {}]   ;;  %s201_s1 = inlined_call_operand.vmem [shape: f32[12,256], index: 1, kind: input, shape index: {}]   ;;  %s202_s2 = inlined_call_operand.vmem [shape: f32[4,1], index: 2, kind: input, shape index: {}]   ;;  %s203_s3 = inlined_call_operand.hbm [shape: f32[4,256], index: 3, kind: output, shape index: {}]  }
   0x1   :  { %v19_v0 = vld [vmem:[%s201_s1 + $0x18] sm:$0xf]  ;;  %v18_v1 = vld [vmem:[%s201_s1 + $0x10] sm:$0xf]  ;;  %v17_v2 = vld [vmem:[%s201_s1 + $0x8] sm:$0xff]  ;;  %101 = vmatprep.mubr.f32.mxu0 %v156_v5 }
   0x2   :  { %127 = vmatprep.subr.msk.mxu0 %vm30_vm0, %v19_v0  ;;  %v16_v3 = vld [vmem:[%s201_s1] sm:$0xff] }
   0x3   :  { %v15_v4 = vld [vmem:[%s200_s0] sm:$0xf]  ;;  %128 = vmatpush1.msk.msra.mxu0 %vm30_vm0, %v18_v1 }
   0x4   :  { %v20_v6 = vld [vmem:[%s202_s2] sm:$0xf] }
   0x5   :  { %8 = vsyncpa [#allocation3], 0  ;;  %67 = vmatprep.subr.mxu0 %v17_v2  ;;  %v157_v7 = vmov 0   ;;  %s158_s1 = smov [#allocation2]  }
   0x6   :  { %133 = vset.pattern.permute.xlu0 %v157_v7  ;;  %68 = vmatpush1.msra.mxu0 %v16_v3  ;;  %s119_s0 = sshll.u32 %s158_s1, 4  ;;  %s120_s0 = int_to_ptr.vmem [resolvable:$true] %s119_s0 }
   0x7   :  { %23 = vperm.xlu0 %133, %v20_v6   ;;  %129 = vmatmul.mubr.msk.f32.vlgmr.msra.gmra.mxu0 %vm26_vm1, %v15_v4  ;;  %s134_s24 = scalar_lea.vmem %s120_s0, 128  ;;  %p139_p1 = scmp.lt.s32.totalorder %s120_s0, %s120_s0 }
   0x8   :  { %p135_p0 = scmp.ne.s32.totalorder %s120_s0, %s134_s24  ;;  %p140_p2 = scmp.lt.s32.totalorder %s134_s24, %s134_s24 }
   0xa   :  { %p141_p3 = por %p140_p2, %p139_p1 }
   0xc   :  { %p142_p4 = pnand %p141_p3, %p135_p0 }
  0x82   :  { %v24_v8 = vpop.permute.xlu0 %23 }
  0xc7   :  { %v103_v9 = vpop.f32.mrf.mxu0 }
  0xc8   :  { %v104_v11 = vadd.f32 %v103_v9, %v24_v8 }
  0xc9   :  { %v105_v10 = vpop.f32.mrf.mxu0 }
  0xca   :  { %v106_v12 = vadd.f32 %v105_v10, %v24_v8 }
  0xcc   :  { %v110_v13 = vcombine.low %v104_v11, %v106_v12 }
  0xce   :  { %112 = vst [vmem:[#allocation2] sm:$0xff] %v110_v13 }
  0xcf   :  { %145 = shalt.err (!%p142_p4)
}
  0xd0   :  { %122 = dma.vmem_to_hbm [thread:$0]  %s120_s0, 128, %s203_s3, [#allocation3]  }
  0xd1   :  { %154 = dma.done.wait [#allocation3], 128  }
  0xd2   :  { %155 = vsyncadd [#allocation3], 4294967168 }
  0xd3   :  { %126 = vsyncpa [#allocation3], 1 }

// kernel: autoencoder_forward.4
= control target key start
LH: loop header
LB: loop body
LE: loop exit
PB: predicated region body
PF: predicated region fallthrough
CT: control target
= control target key end

     0   :  { %v2472_v2 = vmov 0.0   ;;  %vm2473_vm0 = vmmov 0   ;;  %vm49_vm1 = vcmask 523264   ;;  %s2474_s15 = smov 64   ;;  %vm135_vm2 = vcmask 261120   ;;  %s2918_s1 = inlined_call_operand.vmem [shape: f32[64,128], index: 1, kind: input, shape index: {}]   ;;  %s2919_s2 = inlined_call_operand.vmem [shape: f32[32,128], index: 2, kind: input, shape index: {}]   ;;  %s2920_s0 = inlined_call_operand.vmem [shape: f32[16,64], index: 0, kind: input, shape index: {}]   ;;  %s2921_s3 = inlined_call_operand.vmem [shape: f32[1,128], index: 3, kind: input, shape index: {}]   ;;  %s2922_s4 = inlined_call_operand.vmem [shape: f32[32,128], index: 4, kind: input, shape index: {}]   ;;  %s2923_s5 = inlined_call_operand.vmem [shape: f32[32,128], index: 5, kind: input, shape index: {}]   ;;  %s2924_s6 = inlined_call_operand.vmem [shape: f32[1,128], index: 6, kind: input, shape index: {}]   ;;  %s2925_s7 = inlined_call_operand.vmem [shape: f32[32,64], index: 7, kind: input, shape index: {}]   ;;  %s2926_s8 = inlined_call_operand.vmem [shape: f32[1,64], index: 8, kind: input, shape index: {}]   ;;  %s2927_s9 = inlined_call_operand.vmem [shape: f32[16,64], index: 9, kind: output, shape index: {}]  }
   0x1   :  { %v41_v0 = vld [vmem:[%s2918_s1 + $0x38] sm:$0xff]  ;;  %v40_v1 = vld [vmem:[%s2918_s1 + $0x30] sm:$0xff]  ;;  %2142 = vmatprep.subr.mxu1 %v2472_v2  ;;  %2150 = vmatprep.mubr.msk.f32.mxu1 %vm2473_vm0, %v2472_v2  ;;  %v39_v3 = vld [vmem:[%s2918_s1 + $0x28] sm:$0xff]  ;;  %vm1168_vm3 = vcmask 254976  }
   0x2   :  { %2123 = vmatprep.subr.mxu0 %v41_v0  ;;  %v2541_v4 = vld [vmem:[%s2919_s2 + $0x18] sm:$0xff]  ;;  %v2546_v5 = vld [vmem:[%s2919_s2 + $0x10] sm:$0xff]  ;;  %v38_v6 = vld [vmem:[%s2918_s1 + $0x20] sm:$0xff] }
   0x3   :  { %2124 = vmatpush3.msra.mxu0 %v41_v0  ;;  %2143 = vmatpush3.msra.mxu1 %v2541_v4  ;;  %v32_v7 = vld [vmem:[%s2920_s0] sm:$0xff]  ;;  %v2560_v8 = vld [vmem:[%s2919_s2 + $0x8] sm:$0xff]  ;;  %v37_v9 = vld [vmem:[%s2918_s1 + $0x18] sm:$0xff] }
   0x4   :  { %2125 = vmatprep.subr.mxu0 %v40_v1  ;;  %2144 = vmatprep.subr.mxu1 %v2472_v2  ;;  %v2570_v10 = vld [vmem:[%s2919_s2] sm:$0xff]  ;;  %v36_v11 = vld [vmem:[%s2918_s1 + $0x10] sm:$0xff]  ;;  %v35_v12 = vld [vmem:[%s2918_s1 + $0x8] sm:$0xff] }
   0x5   :  { %2126 = vmatpush3.msra.mxu0 %v40_v1  ;;  %2145 = vmatpush3.msra.mxu1 %v2546_v5  ;;  %v34_v13 = vld [vmem:[%s2918_s1] sm:$0xff]  ;;  %v33_v14 = vld [vmem:[%s2920_s0 + $0x8] sm:$0xff] }
   0x6   :  { %2127 = vmatprep.subr.mxu0 %v39_v3  ;;  %2146 = vmatprep.subr.mxu1 %v2472_v2  ;;  %v1984_v17 = vld [vmem:[%s2921_s3] ss:$0 sm:$0xff]  ;;  %s2475_s3 = smov 32  }
   0x7   :  { %2128 = vmatpush3.msra.mxu0 %v39_v3  ;;  %2139 = vmatprep.mubr.msk.f32.mxu0 %vm49_vm1, %v32_v7 }
   0x8   :  { %2129 = vmatprep.subr.mxu0 %v38_v6  ;;  %2147 = vmatpush3.msra.mxu1 %v2560_v8 }
   0x9   :  { %2130 = vmatpush3.msra.mxu0 %v38_v6  ;;  %2148 = vmatprep.subr.mxu1 %v2472_v2 }
   0xa   :  { %2131 = vmatprep.subr.mxu0 %v37_v9  ;;  %2149 = vmatpush3.msra.mxu1 %v2570_v10 }
   0xb   :  { %2132 = vmatpush3.msra.mxu0 %v37_v9  ;;  %2151 = vmatmul.mubr.f32.vlgmr.msra.gmra.mxu1 %v2472_v2 }
   0xc   :  { %2133 = vmatprep.subr.mxu0 %v36_v11  ;;  %2153 = vmatprep.subr.mxu1 %v2472_v2 }
   0xd   :  { %2134 = vmatpush3.msra.mxu0 %v36_v11  ;;  %2154 = vmatpush3.msra.mxu1 %v2541_v4 }
   0xe   :  { %2135 = vmatprep.subr.mxu0 %v35_v12  ;;  %2155 = vmatprep.subr.mxu1 %v2472_v2 }
   0xf   :  { %2136 = vmatpush3.msra.mxu0 %v35_v12  ;;  %2156 = vmatpush3.msra.mxu1 %v2546_v5 }
  0x10   :  { %2137 = vmatprep.subr.mxu0 %v34_v13  ;;  %2157 = vmatprep.subr.mxu1 %v2472_v2 }
  0x11   :  { %2138 = vmatpush3.msra.mxu0 %v34_v13  ;;  %2158 = vmatpush3.msra.mxu1 %v2560_v8 }
  0x12   :  { %2140 = vmatmul.mubr.msk.f32.vlgmr.msra.gmra.mxu0 %vm49_vm1, %v33_v14  ;;  %2159 = vmatprep.subr.mxu1 %v2472_v2 }
  0x13   :  { %2161 = vmatprep.mubr.msk.f32.mxu1 %vm2473_vm0, %v2472_v2  ;;  %2160 = vmatpush3.msra.mxu1 %v2570_v10 }
  0x14   :  { %2164 = vmatprep.subr.mxu0 %v2472_v2  ;;  %2172 = vmatprep.mubr.msk.f32.mxu0 %vm2473_vm0, %v2472_v2 }
  0x15   :  { %2165 = vmatpush3.msra.mxu0 %v2541_v4  ;;  %2175 = vmatprep.subr.mxu1 %v2472_v2 }
  0x16   :  { %2166 = vmatprep.subr.mxu0 %v2472_v2 }
  0x17   :  { %2167 = vmatpush3.msra.mxu0 %v2546_v5 }
  0x18   :  { %2168 = vmatprep.subr.mxu0 %v2472_v2 }
  0x19   :  { %2169 = vmatpush3.msra.mxu0 %v2560_v8 }
  0x1a   :  { %2170 = vmatprep.subr.mxu0 %v2472_v2 }
  0x1b   :  { %2171 = vmatpush3.msra.mxu0 %v2570_v10 }
  0x1c   :  { %2186 = vmatprep.subr.mxu0 %v2472_v2 }
  0xcb   :  { %v205_v15 = vpop.f32.mrf.mxu1 }
  0xcd   :  { %v2152_v16 = vpop.f32.mrf.mxu1 }
  0xd2   :  { %v2141_v18 = vpop.f32.mrf.mxu0 }
  0xd3   :  { %v2614_v19 = vadd.f32 %v2141_v18, %v1984_v17 }
  0xd4   :  { %v122_v20 = vpop.f32.mrf.mxu0 }
  0xd5   :  { %v2616_v21 = vadd.f32 %v1984_v17, %v122_v20 }
  0xd7   :  { %v209_v22 = vadd.f32 %v205_v15, %v2616_v21 }
  0xd9   :  { %2344 = vtanh.f32 %v209_v22  ;;  %v1987_v24 = vmul.f32 -1.442695, %v209_v22 }
  0xdb   :  { %2346 = vpow2.f32 %v1987_v24 }
  0xe6   :  { %v2345_v23 = vpop.eup %2344 }
  0xe7   :  { %219 = vrot.lane.b32.xlu0 %v2345_v23, %s2474_s15 }
  0xe8   :  { %v2347_v25 = vpop.eup %2346 }
  0xe9   :  { %v213_v26 = vadd.f32 1.0, %v2347_v25 }
  0xeb   :  { %2348 = vrcp.f32 %v213_v26 }
  0xf8   :  { %v2349_v27 = vpop.eup %2348 }
  0xf9   :  { %v217_v30 = vmul.f32 0.0, %v2349_v27 }
 0x159   :  { %v220_v28 = vpop.permute.xlu0 %219 }
 0x15a   :  { %v222_v29 = vmul.f32 %v2349_v27, %v220_v28 }
 0x15c   :  { %224 = vrot.lane.b32.xlu0 %v222_v29, %s2475_s3 }
 0x1ce   :  { %v225_v31 = vpop.permute.xlu0 %224 }
 0x1cf   :  { %v227_v32 = vadd.f32 %v225_v31, %v217_v30 }
 0x1d1   :  { %2350 = vtanh.f32 %v227_v32  ;;  %v321_v48 = vrot.slane %v227_v32, 6 }
 0x1de   :  { %v2351_v33 = vpop.eup %2350 }
 0x1df   :  { %230 = vrot.lane.b32.xlu1 %v2351_v33, %s2474_s15 }
 0x251   :  { %v231_v34 = vpop.permute.xlu1 %230 }
 0x252   :  { %v233_v35 = vmul.f32 %v2349_v27, %v231_v34 }
 0x254   :  { %235 = vrot.lane.b32.xlu1 %v233_v35, %s2475_s3 }
 0x2c6   :  { %v236_v36 = vpop.permute.xlu1 %235 }
 0x2c7   :  { %2162 = vmatmul.mubr.msk.f32.vlgmr.msra.gmra.mxu1 %vm135_vm2, %v236_v36 }
 0x2c8   :  { %2176 = vmatpush3.msra.mxu1 %v2541_v4  ;;  %2183 = vmatprep.mubr.msk.f32.mxu1 %vm2473_vm0, %v2472_v2 }
 0x2c9   :  { %2177 = vmatprep.subr.mxu1 %v2472_v2 }
 0x2ca   :  { %2178 = vmatpush3.msra.mxu1 %v2546_v5 }
 0x2cb   :  { %2179 = vmatprep.subr.mxu1 %v2472_v2 }
 0x2cc   :  { %2180 = vmatpush3.msra.mxu1 %v2560_v8 }
 0x2cd   :  { %2181 = vmatprep.subr.mxu1 %v2472_v2 }
 0x2ce   :  { %2182 = vmatpush3.msra.mxu1 %v2570_v10 }
 0x2cf   :  { %2197 = vmatprep.subr.mxu1 %v2472_v2 }
 0x387   :  { %v305_v37 = vpop.f32.mrf.mxu1 }
 0x388   :  { %v310_v38 = vrot.slane %v305_v37, 6 }
 0x389   :  { %v2163_v39 = vpop.f32.mrf.mxu1 }
 0x38a   :  { %v312_v40 = vadd.f32 %v310_v38, %v2616_v21 }
 0x38c   :  { %2352 = vtanh.f32 %v312_v40  ;;  %v1989_v42 = vmul.f32 -1.442695, %v312_v40 }
 0x38e   :  { %2354 = vpow2.f32 %v1989_v42 }
 0x399   :  { %v2353_v41 = vpop.eup %2352 }
 0x39a   :  { %325 = vrot.lane.b32.xlu0 %v2353_v41, %s2474_s15 }
 0x39b   :  { %v2355_v43 = vpop.eup %2354 }
 0x39c   :  { %v316_v44 = vadd.f32 1.0, %v2355_v43 }
 0x39e   :  { %2356 = vrcp.f32 %v316_v44 }
 0x3ab   :  { %v2357_v45 = vpop.eup %2356 }
 0x3ac   :  { %v323_v49 = vmul.f32 %v2357_v45, %v321_v48 }
 0x40c   :  { %v326_v46 = vpop.permute.xlu0 %325 }
 0x40d   :  { %v328_v47 = vmul.f32 %v2357_v45, %v326_v46 }
 0x40f   :  { %330 = vrot.lane.b32.xlu1 %v328_v47, %s2475_s3 }
 0x481   :  { %v331_v50 = vpop.permute.xlu1 %330 }
 0x482   :  { %v333_v51 = vadd.f32 %v331_v50, %v323_v49 }
 0x484   :  { %2358 = vtanh.f32 %v333_v51  ;;  %v428_v7 = vrot.slane %v333_v51, 6 }
 0x491   :  { %v2359_v52 = vpop.eup %2358 }
 0x492   :  { %336 = vrot.lane.b32.xlu0 %v2359_v52, %s2474_s15 }
 0x504   :  { %v337_v53 = vpop.permute.xlu0 %336 }
 0x505   :  { %v339_v54 = vmul.f32 %v2357_v45, %v337_v53 }
 0x507   :  { %v341_v55 = vrot.slane %v339_v54, 2 }
 0x509   :  { %342 = vrot.lane.b32.xlu1 %v341_v55, %s2475_s3 }
 0x57b   :  { %v343_v56 = vpop.permute.xlu1 %342 }
 0x57c   :  { %2173 = vmatmul.mubr.msk.f32.vlgmr.msra.gmra.mxu0 %vm135_vm2, %v343_v56 }
 0x57d   :  { %2187 = vmatpush3.msra.mxu0 %v2541_v4  ;;  %2194 = vmatprep.mubr.msk.f32.mxu0 %vm2473_vm0, %v2472_v2 }
 0x57e   :  { %2188 = vmatprep.subr.mxu0 %v2472_v2 }
 0x57f   :  { %2189 = vmatpush3.msra.mxu0 %v2546_v5 }
 0x580   :  { %2190 = vmatprep.subr.mxu0 %v2472_v2 }
 0x581   :  { %2191 = vmatpush3.msra.mxu0 %v2560_v8 }
 0x582   :  { %2192 = vmatprep.subr.mxu0 %v2472_v2 }
 0x583   :  { %2193 = vmatpush3.msra.mxu0 %v2570_v10 }
 0x584   :  { %2208 = vmatprep.subr.mxu0 %v2472_v2 }
 0x63c   :  { %v412_v57 = vpop.f32.mrf.mxu0 }
 0x63d   :  { %v417_v58 = vrot.slane %v412_v57, 4 }
 0x63e   :  { %v2174_v59 = vpop.f32.mrf.mxu0 }
 0x63f   :  { %v419_v60 = vadd.f32 %v417_v58, %v2616_v21 }
 0x641   :  { %2360 = vtanh.f32 %v419_v60  ;;  %v1991_v62 = vmul.f32 -1.442695, %v419_v60 }
 0x643   :  { %2362 = vpow2.f32 %v1991_v62 }
 0x64e   :  { %v2361_v61 = vpop.eup %2360 }
 0x64f   :  { %432 = vrot.lane.b32.xlu0 %v2361_v61, %s2474_s15 }
 0x650   :  { %v2363_v63 = vpop.eup %2362 }
 0x651   :  { %v423_v0 = vadd.f32 1.0, %v2363_v63 }
 0x653   :  { %2364 = vrcp.f32 %v423_v0 }
 0x660   :  { %v2365_v1 = vpop.eup %2364 }
 0x661   :  { %v430_v9 = vmul.f32 %v2365_v1, %v428_v7 }
 0x6c1   :  { %v433_v3 = vpop.permute.xlu0 %432 }
 0x6c2   :  { %v435_v6 = vmul.f32 %v2365_v1, %v433_v3 }
 0x6c4   :  { %437 = vrot.lane.b32.xlu1 %v435_v6, %s2475_s3 }
 0x736   :  { %v438_v11 = vpop.permute.xlu1 %437 }
 0x737   :  { %v440_v12 = vadd.f32 %v438_v11, %v430_v9 }
 0x739   :  { %2366 = vtanh.f32 %v440_v12  ;;  %v535_v31 = vrot.slane %v440_v12, 6 }
 0x746   :  { %v2367_v13 = vpop.eup %2366 }
 0x747   :  { %443 = vrot.lane.b32.xlu0 %v2367_v13, %s2474_s15 }
 0x7b9   :  { %v444_v14 = vpop.permute.xlu0 %443 }
 0x7ba   :  { %v446_v15 = vmul.f32 %v2365_v1, %v444_v14 }
 0x7bc   :  { %v448_v16 = vrot.slane %v446_v15, 4 }
 0x7be   :  { %449 = vrot.lane.b32.xlu1 %v448_v16, %s2475_s3 }
 0x830   :  { %v450_v17 = vpop.permute.xlu1 %449 }
 0x831   :  { %2184 = vmatmul.mubr.msk.f32.vlgmr.msra.gmra.mxu1 %vm135_vm2, %v450_v17 }
 0x832   :  { %2198 = vmatpush3.msra.mxu1 %v2541_v4  ;;  %2205 = vmatprep.mubr.msk.f32.mxu1 %vm2473_vm0, %v2472_v2 }
 0x833   :  { %2199 = vmatprep.subr.mxu1 %v2472_v2 }
 0x834   :  { %2200 = vmatpush3.msra.mxu1 %v2546_v5 }
 0x835   :  { %2201 = vmatprep.subr.mxu1 %v2472_v2 }
 0x836   :  { %2202 = vmatpush3.msra.mxu1 %v2560_v8 }
 0x837   :  { %2203 = vmatprep.subr.mxu1 %v2472_v2 }
 0x838   :  { %2204 = vmatpush3.msra.mxu1 %v2570_v10 }
 0x839   :  { %2219 = vmatprep.subr.mxu1 %v2472_v2 }
 0x8f1   :  { %v519_v18 = vpop.f32.mrf.mxu1 }
 0x8f2   :  { %v524_v20 = vrot.slane %v519_v18, 2 }
 0x8f3   :  { %v2185_v22 = vpop.f32.mrf.mxu1 }
 0x8f4   :  { %v526_v23 = vadd.f32 %v524_v20, %v2616_v21 }
 0x8f6   :  { %2368 = vtanh.f32 %v526_v23  ;;  %v1993_v25 = vmul.f32 -1.442695, %v526_v23 }
 0x8f8   :  { %2370 = vpow2.f32 %v1993_v25 }
 0x903   :  { %v2369_v24 = vpop.eup %2368 }
 0x904   :  { %539 = vrot.lane.b32.xlu0 %v2369_v24, %s2474_s15 }
 0x905   :  { %v2371_v26 = vpop.eup %2370 }
 0x906   :  { %v530_v27 = vadd.f32 1.0, %v2371_v26 }
 0x908   :  { %2372 = vrcp.f32 %v530_v27 }
 0x915   :  { %v2373_v28 = vpop.eup %2372 }
 0x916   :  { %v537_v32 = vmul.f32 %v2373_v28, %v535_v31 }
 0x976   :  { %v540_v29 = vpop.permute.xlu0 %539 }
 0x977   :  { %v542_v30 = vmul.f32 %v2373_v28, %v540_v29 }
 0x979   :  { %544 = vrot.lane.b32.xlu1 %v542_v30, %s2475_s3 }
 0x9eb   :  { %v545_v33 = vpop.permute.xlu1 %544 }
 0x9ec   :  { %v547_v34 = vadd.f32 %v545_v33, %v537_v32 }
 0x9ee   :  { %2374 = vtanh.f32 %v547_v34  ;;  %v639_v49 = vrot.slane %v547_v34, 6 }
 0x9fb   :  { %v2375_v21 = vpop.eup %2374 }
 0x9fc   :  { %550 = vrot.lane.b32.xlu0 %v2375_v21, %s2474_s15 }
 0xa6e   :  { %v551_v35 = vpop.permute.xlu0 %550 }
 0xa6f   :  { %v553_v36 = vmul.f32 %v2373_v28, %v551_v35 }
 0xa71   :  { %v555_v37 = vrot.slane %v553_v36, 6 }
 0xa73   :  { %556 = vrot.lane.b32.xlu1 %v555_v37, %s2475_s3 }
 0xae5   :  { %v557_v38 = vpop.permute.xlu1 %556 }
 0xae6   :  { %2195 = vmatmul.mubr.msk.f32.vlgmr.msra.gmra.mxu0 %vm135_vm2, %v557_v38 }
 0xae7   :  { %2209 = vmatpush3.msra.mxu0 %v2541_v4  ;;  %2216 = vmatprep.mubr.msk.f32.mxu0 %vm2473_vm0, %v2472_v2 }
 0xae8   :  { %2210 = vmatprep.subr.mxu0 %v2472_v2 }
 0xae9   :  { %2211 = vmatpush3.msra.mxu0 %v2546_v5 }
 0xaea   :  { %2212 = vmatprep.subr.mxu0 %v2472_v2 }
 0xaeb   :  { %2213 = vmatpush3.msra.mxu0 %v2560_v8 }
 0xaec   :  { %2214 = vmatprep.subr.mxu0 %v2472_v2 }
 0xaed   :  { %2215 = vmatpush3.msra.mxu0 %v2570_v10 }
 0xaee   :  { %2230 = vmatprep.subr.mxu0 %v2472_v2 }
 0xba6   :  { %v626_v39 = vpop.f32.mrf.mxu0 }
 0xba7   :  { %v630_v40 = vadd.f32 %v626_v39, %v2614_v19 }
 0xba8   :  { %v2196_v41 = vpop.f32.mrf.mxu0 }
 0xba9   :  { %2376 = vtanh.f32 %v630_v40  ;;  %v1995_v43 = vmul.f32 -1.442695, %v630_v40 }
 0xbab   :  { %2378 = vpow2.f32 %v1995_v43 }
 0xbb6   :  { %v2377_v42 = vpop.eup %2376 }
 0xbb7   :  { %643 = vrot.lane.b32.xlu0 %v2377_v42, %s2474_s15 }
 0xbb8   :  { %v2379_v44 = vpop.eup %2378 }
 0xbb9   :  { %v634_v45 = vadd.f32 1.0, %v2379_v44 }
 0xbbb   :  { %2380 = vrcp.f32 %v634_v45 }
 0xbc8   :  { %v2381_v46 = vpop.eup %2380 }
 0xbc9   :  { %v641_v50 = vmul.f32 %v2381_v46, %v639_v49 }
 0xc29   :  { %v644_v47 = vpop.permute.xlu0 %643 }
 0xc2a   :  { %v646_v48 = vmul.f32 %v2381_v46, %v644_v47 }
 0xc2c   :  { %648 = vrot.lane.b32.xlu1 %v646_v48, %s2475_s3 }
 0xc9e   :  { %v649_v51 = vpop.permute.xlu1 %648 }
 0xc9f   :  { %v651_v52 = vadd.f32 %v649_v51, %v641_v50  ;;  %v2723_v50 = vld [vmem:[%s2923_s5 + $0x18] sm:$0xff]  ;;  %v980_v51 = vld [vmem:[%s2922_s4 + $0x10] sm:$0xff] }
 0xca1   :  { %2382 = vtanh.f32 %v651_v52 }
 0xcae   :  { %v2383_v53 = vpop.eup %2382 }
 0xcaf   :  { %654 = vrot.lane.b32.xlu0 %v2383_v53, %s2474_s15  ;;  %v979_v53 = vld [vmem:[%s2922_s4 + $0x8] sm:$0xff] }
 0xd21   :  { %v655_v54 = vpop.permute.xlu0 %654 }
 0xd22   :  { %v657_v55 = vmul.f32 %v2381_v46, %v655_v54  ;;  %v2742_v54 = vld [vmem:[%s2923_s5 + $0x8] sm:$0xff] }
 0xd24   :  { %659 = vrot.lane.b32.xlu1 %v657_v55, %s2475_s3  ;;  %v978_v55 = vld [vmem:[%s2922_s4] sm:$0xff] }
 0xd96   :  { %v660_v56 = vpop.permute.xlu1 %659 }
 0xd97   :  { %2206 = vmatmul.mubr.msk.f32.vlgmr.msra.gmra.mxu1 %vm135_vm2, %v660_v56  ;;  %v2753_v56 = vld [vmem:[%s2923_s5] sm:$0xff] }
 0xd98   :  { %2220 = vmatpush3.msra.mxu1 %v2541_v4  ;;  %2227 = vmatprep.mubr.msk.f32.mxu1 %vm2473_vm0, %v2472_v2 }
 0xd99   :  { %2221 = vmatprep.subr.mxu1 %v2472_v2 }
 0xd9a   :  { %2222 = vmatpush3.msra.mxu1 %v2546_v5 }
 0xd9b   :  { %2223 = vmatprep.subr.mxu1 %v2472_v2 }
 0xd9c   :  { %2224 = vmatpush3.msra.mxu1 %v2560_v8 }
 0xd9d   :  { %2225 = vmatprep.subr.mxu1 %v2472_v2 }
 0xd9e   :  { %2226 = vmatpush3.msra.mxu1 %v2570_v10  ;;  %v745_v10 = vrot.slane %v651_v52, 6  ;;  %v2732_v52 = vld [vmem:[%s2923_s5 + $0x10] sm:$0xff] }
 0xd9f   :  { %2241 = vmatprep.subr.mxu1 %v2472_v2 }
 0xe57   :  { %v729_v57 = vpop.f32.mrf.mxu1 }
 0xe58   :  { %v734_v58 = vrot.slane %v729_v57, 6 }
 0xe59   :  { %v2207_v4 = vpop.f32.mrf.mxu1 }
 0xe5a   :  { %v736_v59 = vadd.f32 %v734_v58, %v2614_v19 }
 0xe5c   :  { %2384 = vtanh.f32 %v736_v59  ;;  %v1997_v5 = vmul.f32 -1.442695, %v736_v59 }
 0xe5e   :  { %2386 = vpow2.f32 %v1997_v5 }
 0xe69   :  { %v2385_v60 = vpop.eup %2384 }
 0xe6a   :  { %749 = vrot.lane.b32.xlu0 %v2385_v60, %s2474_s15 }
 0xe6b   :  { %v2387_v61 = vpop.eup %2386 }
 0xe6c   :  { %v740_v62 = vadd.f32 1.0, %v2387_v61 }
 0xe6e   :  { %2388 = vrcp.f32 %v740_v62  ;;  %v2002_v62 = vld [vmem:[%s2924_s6] ss:$0 sm:$0xff] }
 0xe7b   :  { %v2389_v8 = vpop.eup %2388 }
 0xe7c   :  { %v747_v1 = vmul.f32 %v2389_v8, %v745_v10 }
 0xedc   :  { %v750_v63 = vpop.permute.xlu0 %749 }
 0xedd   :  { %v752_v0 = vmul.f32 %v2389_v8, %v750_v63 }
 0xedf   :  { %754 = vrot.lane.b32.xlu1 %v752_v0, %s2475_s3 }
 0xf51   :  { %v755_v3 = vpop.permute.xlu1 %754 }
 0xf52   :  { %v757_v6 = vadd.f32 %v755_v3, %v747_v1 }
 0xf54   :  { %2390 = vtanh.f32 %v757_v6  ;;  %v852_v27 = vrot.slane %v757_v6, 6 }
 0xf61   :  { %v2391_v7 = vpop.eup %2390 }
 0xf62   :  { %760 = vrot.lane.b32.xlu0 %v2391_v7, %s2474_s15 }
 0xfd4   :  { %v761_v9 = vpop.permute.xlu0 %760 }
 0xfd5   :  { %v763_v11 = vmul.f32 %v2389_v8, %v761_v9 }
 0xfd7   :  { %v765_v12 = vrot.slane %v763_v11, 2 }
 0xfd9   :  { %766 = vrot.lane.b32.xlu1 %v765_v12, %s2475_s3 }
0x104b   :  { %v767_v13 = vpop.permute.xlu1 %766 }
0x104c   :  { %2217 = vmatmul.mubr.msk.f32.vlgmr.msra.gmra.mxu0 %vm135_vm2, %v767_v13 }
0x104d   :  { %2238 = vmatprep.mubr.msk.f32.mxu0 %vm2473_vm0, %v2472_v2 }
0x110c   :  { %v836_v14 = vpop.f32.mrf.mxu0 }
0x110d   :  { %v841_v15 = vrot.slane %v836_v14, 4 }
0x110e   :  { %v2218_v16 = vpop.f32.mrf.mxu0 }
0x110f   :  { %v843_v17 = vadd.f32 %v841_v15, %v2614_v19 }
0x1111   :  { %2392 = vtanh.f32 %v843_v17  ;;  %v1999_v20 = vmul.f32 -1.442695, %v843_v17 }
0x1113   :  { %2394 = vpow2.f32 %v1999_v20 }
0x111e   :  { %v2393_v18 = vpop.eup %2392 }
0x111f   :  { %856 = vrot.lane.b32.xlu0 %v2393_v18, %s2474_s15 }
0x1120   :  { %v2395_v22 = vpop.eup %2394 }
0x1121   :  { %v847_v23 = vadd.f32 1.0, %v2395_v22 }
0x1123   :  { %2396 = vrcp.f32 %v847_v23 }
0x1130   :  { %v2397_v24 = vpop.eup %2396 }
0x1131   :  { %v854_v28 = vmul.f32 %v2397_v24, %v852_v27 }
0x1191   :  { %v857_v25 = vpop.permute.xlu0 %856 }
0x1192   :  { %v859_v26 = vmul.f32 %v2397_v24, %v857_v25 }
0x1194   :  { %861 = vrot.lane.b32.xlu1 %v859_v26, %s2475_s3 }
0x1206   :  { %v862_v29 = vpop.permute.xlu1 %861 }
0x1207   :  { %v864_v30 = vadd.f32 %v862_v29, %v854_v28 }
0x1209   :  { %2398 = vtanh.f32 %v864_v30  ;;  %v959_v46 = vrot.slane %v864_v30, 6 }
0x1216   :  { %v2399_v31 = vpop.eup %2398 }
0x1217   :  { %867 = vrot.lane.b32.xlu0 %v2399_v31, %s2474_s15 }
0x1289   :  { %v868_v32 = vpop.permute.xlu0 %867 }
0x128a   :  { %v870_v33 = vmul.f32 %v2397_v24, %v868_v32 }
0x128c   :  { %v872_v34 = vrot.slane %v870_v33, 4 }
0x128e   :  { %873 = vrot.lane.b32.xlu1 %v872_v34, %s2475_s3 }
0x1300   :  { %v874_v21 = vpop.permute.xlu1 %873 }
0x1301   :  { %2228 = vmatmul.mubr.msk.f32.vlgmr.msra.gmra.mxu1 %vm135_vm2, %v874_v21 }
0x1302   :  { %2249 = vmatprep.mubr.msk.f32.mxu1 %vm2473_vm0, %v2472_v2  ;;  %2242 = vmatpush3.msra.mxu1 %v2723_v50 }
0x1303   :  { %2243 = vmatprep.subr.mxu1 %v2472_v2 }
0x1304   :  { %2244 = vmatpush3.msra.mxu1 %v2732_v52 }
0x1305   :  { %2245 = vmatprep.subr.mxu1 %v2472_v2 }
0x1306   :  { %2246 = vmatpush3.msra.mxu1 %v2742_v54 }
0x1307   :  { %2247 = vmatprep.subr.mxu1 %v2472_v2 }
0x1308   :  { %2248 = vmatpush3.msra.mxu1 %v2753_v56 }
0x1309   :  { %2250 = vmatmul.mubr.f32.vlgmr.msra.gmra.mxu1 %v2472_v2  ;;  %2263 = vmatprep.subr.mxu1 %v2472_v2 }
0x130a   :  { %2264 = vmatpush3.msra.mxu1 %v2723_v50  ;;  %2271 = vmatprep.mubr.msk.f32.mxu1 %vm2473_vm0, %v2472_v2 }
0x130b   :  { %2265 = vmatprep.subr.mxu1 %v2472_v2 }
0x130c   :  { %2266 = vmatpush3.msra.mxu1 %v2732_v52 }
0x130d   :  { %2267 = vmatprep.subr.mxu1 %v2472_v2 }
0x130e   :  { %2268 = vmatpush3.msra.mxu1 %v2742_v54 }
0x130f   :  { %2269 = vmatprep.subr.mxu1 %v2472_v2 }
0x1310   :  { %2270 = vmatpush3.msra.mxu1 %v2753_v56 }
0x1311   :  { %2285 = vmatprep.subr.mxu1 %v2472_v2 }
0x13c1   :  { %v943_v35 = vpop.f32.mrf.mxu1 }
0x13c2   :  { %v948_v36 = vrot.slane %v943_v35, 2 }
0x13c3   :  { %v2229_v37 = vpop.f32.mrf.mxu1 }
0x13c4   :  { %v950_v38 = vadd.f32 %v948_v36, %v2614_v19  ;;  %v981_v19 = vld [vmem:[%s2922_s4 + $0x18] sm:$0xff] }
0x13c5   :  { %2231 = vmatpush3.msra.mxu0 %v981_v19 }
0x13c6   :  { %2400 = vtanh.f32 %v950_v38  ;;  %v2001_v40 = vmul.f32 -1.442695, %v950_v38  ;;  %2232 = vmatprep.subr.mxu0 %v2472_v2 }
0x13c7   :  { %2233 = vmatpush3.msra.mxu0 %v980_v51 }
0x13c8   :  { %2402 = vpow2.f32 %v2001_v40  ;;  %2234 = vmatprep.subr.mxu0 %v2472_v2 }
0x13c9   :  { %2235 = vmatpush3.msra.mxu0 %v979_v53  ;;  %v1135_v5 = vpop.f32.mrf.mxu1 }
0x13ca   :  { %2236 = vmatprep.subr.mxu0 %v2472_v2 }
0x13cb   :  { %2237 = vmatpush3.msra.mxu0 %v978_v55  ;;  %v2251_v61 = vpop.f32.mrf.mxu1 }
0x13cc   :  { %2252 = vmatprep.subr.mxu0 %v2472_v2 }
0x13d3   :  { %v2401_v39 = vpop.eup %2400 }
0x13d4   :  { %963 = vrot.lane.b32.xlu0 %v2401_v39, %s2474_s15 }
0x13d5   :  { %v2403_v41 = vpop.eup %2402 }
0x13d6   :  { %v954_v42 = vadd.f32 1.0, %v2403_v41 }
0x13d8   :  { %2404 = vrcp.f32 %v954_v42 }
0x13e5   :  { %v2405_v43 = vpop.eup %2404 }
0x13e6   :  { %v961_v47 = vmul.f32 %v2405_v43, %v959_v46 }
0x1446   :  { %v964_v44 = vpop.permute.xlu0 %963 }
0x1447   :  { %v966_v45 = vmul.f32 %v2405_v43, %v964_v44 }
0x1449   :  { %968 = vrot.lane.b32.xlu1 %v966_v45, %s2475_s3 }
0x14bb   :  { %v969_v48 = vpop.permute.xlu1 %968 }
0x14bc   :  { %v971_v49 = vadd.f32 %v969_v48, %v961_v47 }
0x14be   :  { %2406 = vtanh.f32 %v971_v49 }
0x14cb   :  { %v2407_v57 = vpop.eup %2406 }
0x14cc   :  { %974 = vrot.lane.b32.xlu0 %v2407_v57, %s2474_s15 }
0x153e   :  { %v975_v58 = vpop.permute.xlu0 %974 }
0x153f   :  { %v977_v4 = vmul.f32 %v2405_v43, %v975_v58 }
0x1541   :  { %v990_v59 = vrot.slane %v977_v4, 6 }
0x1543   :  { %991 = vrot.lane.b32.xlu1 %v990_v59, %s2475_s3 }
0x15b5   :  { %v992_v60 = vpop.permute.xlu1 %991 }
0x15b6   :  { %2239 = vmatmul.mubr.msk.f32.vlgmr.msra.gmra.mxu0 %vm135_vm2, %v992_v60 }
0x15b7   :  { %2253 = vmatpush3.msra.mxu0 %v2723_v50  ;;  %2260 = vmatprep.mubr.msk.f32.mxu0 %vm2473_vm0, %v2472_v2 }
0x15b8   :  { %2254 = vmatprep.subr.mxu0 %v2472_v2 }
0x15b9   :  { %2255 = vmatpush3.msra.mxu0 %v2732_v52 }
0x15ba   :  { %2256 = vmatprep.subr.mxu0 %v2472_v2 }
0x15bb   :  { %2257 = vmatpush3.msra.mxu0 %v2742_v54 }
0x15bc   :  { %2258 = vmatprep.subr.mxu0 %v2472_v2 }
0x15bd   :  { %2259 = vmatpush3.msra.mxu0 %v2753_v56 }
0x15be   :  { %2274 = vmatprep.subr.mxu0 %v2472_v2 }
0x1676   :  { %v1061_v8 = vpop.f32.mrf.mxu0 }
0x1677   :  { %v2788_v63 = vadd.f32 %v2002_v62, %v1061_v8 }
0x1678   :  { %v2240_v0 = vpop.f32.mrf.mxu0 }
0x1679   :  { %v1139_v10 = vadd.f32 %v1135_v5, %v2788_v63 }
0x167b   :  { %2408 = vtanh.f32 %v1139_v10  ;;  %v2004_v3 = vmul.f32 -1.442695, %v1139_v10 }
0x167d   :  { %2410 = vpow2.f32 %v2004_v3 }
0x1688   :  { %v2409_v1 = vpop.eup %2408 }
0x1689   :  { %1149 = vrot.lane.b32.xlu0 %v2409_v1, %s2474_s15 }
0x168a   :  { %v2411_v6 = vpop.eup %2410 }
0x168b   :  { %v1143_v7 = vadd.f32 1.0, %v2411_v6 }
0x168d   :  { %2412 = vrcp.f32 %v1143_v7 }
0x169a   :  { %v2413_v9 = vpop.eup %2412 }
0x169b   :  { %v1147_v13 = vmul.f32 0.0, %v2413_v9 }
0x16fb   :  { %v1150_v11 = vpop.permute.xlu0 %1149 }
0x16fc   :  { %v1152_v12 = vmul.f32 %v2413_v9, %v1150_v11 }
0x16fe   :  { %1154 = vrot.lane.b32.xlu1 %v1152_v12, %s2475_s3 }
0x1770   :  { %v1155_v14 = vpop.permute.xlu1 %1154 }
0x1771   :  { %v1157_v15 = vadd.f32 %v1155_v14, %v1147_v13 }
0x1773   :  { %2414 = vtanh.f32 %v1157_v15 }
0x1780   :  { %v2415_v16 = vpop.eup %2414 }
0x1781   :  { %1160 = vrot.lane.b32.xlu0 %v2415_v16, %s2474_s15 }
0x17f3   :  { %v1161_v17 = vpop.permute.xlu0 %1160 }
0x17f4   :  { %v1163_v18 = vmul.f32 %v2413_v9, %v1161_v17 }
0x17f6   :  { %1165 = vrot.lane.b32.xlu1 %v1163_v18, %s2475_s3 }
0x1868   :  { %v1166_v20 = vpop.permute.xlu1 %1165 }
0x1869   :  { %1169 = vst.msk [vmem:[#allocation2] sm:$0x3] %vm1168_vm3, %v1166_v20  ;;  %2261 = vmatmul.mubr.msk.f32.vlgmr.msra.gmra.mxu0 %vm135_vm2, %v1166_v20 }
0x186a   :  { %2275 = vmatpush3.msra.mxu0 %v2723_v50  ;;  %2282 = vmatprep.mubr.msk.f32.mxu0 %vm2473_vm0, %v2472_v2 }
0x186b   :  { %2276 = vmatprep.subr.mxu0 %v2472_v2 }
0x186c   :  { %2277 = vmatpush3.msra.mxu0 %v2732_v52 }
0x186d   :  { %2278 = vmatprep.subr.mxu0 %v2472_v2 }
0x186e   :  { %2279 = vmatpush3.msra.mxu0 %v2742_v54 }
0x186f   :  { %2280 = vmatprep.subr.mxu0 %v2472_v2 }
0x1870   :  { %2281 = vmatpush3.msra.mxu0 %v2753_v56 }
0x1871   :  { %2296 = vmatprep.subr.mxu0 %v2472_v2 }
0x1929   :  { %v1238_v22 = vpop.f32.mrf.mxu0 }
0x192a   :  { %v1242_v23 = vadd.f32 %v1238_v22, %v2788_v63 }
0x192b   :  { %v2262_v24 = vpop.f32.mrf.mxu0 }
0x192c   :  { %2416 = vtanh.f32 %v1242_v23  ;;  %v2006_v26 = vmul.f32 -1.442695, %v1242_v23 }
0x192e   :  { %2418 = vpow2.f32 %v2006_v26 }
0x1939   :  { %v2417_v25 = vpop.eup %2416 }
0x193a   :  { %1252 = vrot.lane.b32.xlu0 %v2417_v25, %s2474_s15 }
0x193b   :  { %v2419_v27 = vpop.eup %2418 }
0x193c   :  { %v1246_v28 = vadd.f32 1.0, %v2419_v27 }
0x193e   :  { %2420 = vrcp.f32 %v1246_v28 }
0x194b   :  { %v2421_v29 = vpop.eup %2420 }
0x194c   :  { %v1250_v32 = vmul.f32 %v2421_v29, %v1157_v15 }
0x19ac   :  { %v1253_v30 = vpop.permute.xlu0 %1252 }
0x19ad   :  { %v1255_v31 = vmul.f32 %v2421_v29, %v1253_v30 }
0x19af   :  { %1257 = vrot.lane.b32.xlu1 %v1255_v31, %s2475_s3 }
0x1a21   :  { %v1258_v33 = vpop.permute.xlu1 %1257 }
0x1a22   :  { %v1260_v34 = vadd.f32 %v1258_v33, %v1250_v32 }
0x1a24   :  { %2422 = vtanh.f32 %v1260_v34 }
0x1a31   :  { %v2423_v21 = vpop.eup %2422 }
0x1a32   :  { %1263 = vrot.lane.b32.xlu0 %v2423_v21, %s2474_s15 }
0x1aa4   :  { %v1264_v35 = vpop.permute.xlu0 %1263 }
0x1aa5   :  { %v1266_v36 = vmul.f32 %v2421_v29, %v1264_v35 }
0x1aa7   :  { %1268 = vrot.lane.b32.xlu1 %v1266_v36, %s2475_s3 }
0x1b19   :  { %v1269_v37 = vpop.permute.xlu1 %1268 }
0x1b1a   :  { %1271 = vst.msk [vmem:[#allocation2 + $0x2] sm:$0x3] %vm1168_vm3, %v1269_v37  ;;  %2272 = vmatmul.mubr.msk.f32.vlgmr.msra.gmra.mxu1 %vm135_vm2, %v1269_v37 }
0x1b1b   :  { %2286 = vmatpush3.msra.mxu1 %v2723_v50  ;;  %2293 = vmatprep.mubr.msk.f32.mxu1 %vm2473_vm0, %v2472_v2 }
0x1b1c   :  { %2287 = vmatprep.subr.mxu1 %v2472_v2 }
0x1b1d   :  { %2288 = vmatpush3.msra.mxu1 %v2732_v52 }
0x1b1e   :  { %2289 = vmatprep.subr.mxu1 %v2472_v2 }
0x1b1f   :  { %2290 = vmatpush3.msra.mxu1 %v2742_v54 }
0x1b20   :  { %2291 = vmatprep.subr.mxu1 %v2472_v2 }
0x1b21   :  { %2292 = vmatpush3.msra.mxu1 %v2753_v56 }
0x1b22   :  { %2307 = vmatprep.subr.mxu1 %v2472_v2 }
0x1bda   :  { %v1340_v38 = vpop.f32.mrf.mxu1 }
0x1bdb   :  { %v1344_v39 = vadd.f32 %v1340_v38, %v2788_v63 }
0x1bdc   :  { %v2273_v40 = vpop.f32.mrf.mxu1 }
0x1bdd   :  { %2424 = vtanh.f32 %v1344_v39  ;;  %v2008_v42 = vmul.f32 -1.442695, %v1344_v39 }
0x1bdf   :  { %2426 = vpow2.f32 %v2008_v42 }
0x1bea   :  { %v2425_v41 = vpop.eup %2424 }
0x1beb   :  { %1354 = vrot.lane.b32.xlu0 %v2425_v41, %s2474_s15 }
0x1bec   :  { %v2427_v43 = vpop.eup %2426 }
0x1bed   :  { %v1348_v44 = vadd.f32 1.0, %v2427_v43 }
0x1bef   :  { %2428 = vrcp.f32 %v1348_v44 }
0x1bfc   :  { %v2429_v45 = vpop.eup %2428 }
0x1bfd   :  { %v1352_v48 = vmul.f32 %v2429_v45, %v1260_v34 }
0x1c5d   :  { %v1355_v46 = vpop.permute.xlu0 %1354 }
0x1c5e   :  { %v1357_v47 = vmul.f32 %v2429_v45, %v1355_v46 }
0x1c60   :  { %1359 = vrot.lane.b32.xlu1 %v1357_v47, %s2475_s3 }
0x1cd2   :  { %v1360_v49 = vpop.permute.xlu1 %1359 }
0x1cd3   :  { %v1362_v19 = vadd.f32 %v1360_v49, %v1352_v48 }
0x1cd5   :  { %2430 = vtanh.f32 %v1362_v19 }
0x1ce2   :  { %v2431_v51 = vpop.eup %2430 }
0x1ce3   :  { %1365 = vrot.lane.b32.xlu0 %v2431_v51, %s2474_s15 }
0x1d55   :  { %v1366_v53 = vpop.permute.xlu0 %1365 }
0x1d56   :  { %v1368_v55 = vmul.f32 %v2429_v45, %v1366_v53 }
0x1d58   :  { %1370 = vrot.lane.b32.xlu1 %v1368_v55, %s2475_s3 }
0x1dca   :  { %v1371_v57 = vpop.permute.xlu1 %1370 }
0x1dcb   :  { %1373 = vst.msk [vmem:[#allocation2 + $0x4] sm:$0x3] %vm1168_vm3, %v1371_v57  ;;  %2283 = vmatmul.mubr.msk.f32.vlgmr.msra.gmra.mxu0 %vm135_vm2, %v1371_v57 }
0x1dcc   :  { %2297 = vmatpush3.msra.mxu0 %v2723_v50  ;;  %2304 = vmatprep.mubr.msk.f32.mxu0 %vm2473_vm0, %v2472_v2 }
0x1dcd   :  { %2298 = vmatprep.subr.mxu0 %v2472_v2 }
0x1dce   :  { %2299 = vmatpush3.msra.mxu0 %v2732_v52 }
0x1dcf   :  { %2300 = vmatprep.subr.mxu0 %v2472_v2 }
0x1dd0   :  { %2301 = vmatpush3.msra.mxu0 %v2742_v54 }
0x1dd1   :  { %2302 = vmatprep.subr.mxu0 %v2472_v2 }
0x1dd2   :  { %2303 = vmatpush3.msra.mxu0 %v2753_v56 }
0x1dd3   :  { %2318 = vmatprep.subr.mxu0 %v2472_v2 }
0x1e8b   :  { %v1442_v58 = vpop.f32.mrf.mxu0 }
0x1e8c   :  { %v1446_v4 = vadd.f32 %v1442_v58, %v2788_v63 }
0x1e8d   :  { %v2284_v59 = vpop.f32.mrf.mxu0 }
0x1e8e   :  { %2432 = vtanh.f32 %v1446_v4  ;;  %v2010_v5 = vmul.f32 -1.442695, %v1446_v4 }
0x1e90   :  { %2434 = vpow2.f32 %v2010_v5 }
0x1e9b   :  { %v2433_v60 = vpop.eup %2432 }
0x1e9c   :  { %1456 = vrot.lane.b32.xlu0 %v2433_v60, %s2474_s15 }
0x1e9d   :  { %v2435_v61 = vpop.eup %2434 }
0x1e9e   :  { %v1450_v62 = vadd.f32 1.0, %v2435_v61 }
0x1ea0   :  { %2436 = vrcp.f32 %v1450_v62 }
0x1ead   :  { %v2437_v8 = vpop.eup %2436 }
0x1eae   :  { %v1454_v1 = vmul.f32 %v2437_v8, %v1362_v19 }
0x1f0e   :  { %v1457_v0 = vpop.permute.xlu0 %1456 }
0x1f0f   :  { %v1459_v10 = vmul.f32 %v2437_v8, %v1457_v0 }
0x1f11   :  { %1461 = vrot.lane.b32.xlu1 %v1459_v10, %s2475_s3 }
0x1f83   :  { %v1462_v3 = vpop.permute.xlu1 %1461 }
0x1f84   :  { %v1464_v6 = vadd.f32 %v1462_v3, %v1454_v1 }
0x1f86   :  { %2438 = vtanh.f32 %v1464_v6 }
0x1f93   :  { %v2439_v7 = vpop.eup %2438 }
0x1f94   :  { %1467 = vrot.lane.b32.xlu0 %v2439_v7, %s2474_s15 }
0x2006   :  { %v1468_v9 = vpop.permute.xlu0 %1467 }
0x2007   :  { %v1470_v11 = vmul.f32 %v2437_v8, %v1468_v9 }
0x2009   :  { %1472 = vrot.lane.b32.xlu1 %v1470_v11, %s2475_s3 }
0x207b   :  { %v1473_v12 = vpop.permute.xlu1 %1472 }
0x207c   :  { %1475 = vst.msk [vmem:[#allocation2 + $0x6] sm:$0x3] %vm1168_vm3, %v1473_v12  ;;  %2294 = vmatmul.mubr.msk.f32.vlgmr.msra.gmra.mxu1 %vm135_vm2, %v1473_v12 }
0x207d   :  { %2308 = vmatpush3.msra.mxu1 %v2723_v50  ;;  %2315 = vmatprep.mubr.msk.f32.mxu1 %vm2473_vm0, %v2472_v2 }
0x207e   :  { %2309 = vmatprep.subr.mxu1 %v2472_v2 }
0x207f   :  { %2310 = vmatpush3.msra.mxu1 %v2732_v52 }
0x2080   :  { %2311 = vmatprep.subr.mxu1 %v2472_v2 }
0x2081   :  { %2312 = vmatpush3.msra.mxu1 %v2742_v54 }
0x2082   :  { %2313 = vmatprep.subr.mxu1 %v2472_v2 }
0x2083   :  { %2314 = vmatpush3.msra.mxu1 %v2753_v56  ;;  %v1884_v43 = vld [vmem:[#allocation2] sm:$0xff] }
0x213c   :  { %v1544_v13 = vpop.f32.mrf.mxu1 }
0x213d   :  { %v1548_v14 = vadd.f32 %v1544_v13, %v2788_v63 }
0x213e   :  { %v2295_v15 = vpop.f32.mrf.mxu1 }
0x213f   :  { %2440 = vtanh.f32 %v1548_v14  ;;  %v2012_v17 = vmul.f32 -1.442695, %v1548_v14  ;;  %v1889_v15 = vld [vmem:[%s2925_s7 + $0x18] sm:$0xff] }
0x2140   :  { %2329 = vmatprep.subr.mxu1 %v1889_v15 }
0x2141   :  { %2442 = vpow2.f32 %v2012_v17  ;;  %v1887_v17 = vld [vmem:[%s2925_s7 + $0x8] sm:$0xff] }
0x214c   :  { %v2441_v16 = vpop.eup %2440 }
0x214d   :  { %1558 = vrot.lane.b32.xlu0 %v2441_v16, %s2474_s15  ;;  %v1888_v16 = vld [vmem:[%s2925_s7 + $0x10] sm:$0xff] }
0x214e   :  { %v2443_v18 = vpop.eup %2442 }
0x214f   :  { %v1552_v20 = vadd.f32 1.0, %v2443_v18  ;;  %v1886_v18 = vld [vmem:[%s2925_s7] sm:$0xff] }
0x2151   :  { %2444 = vrcp.f32 %v1552_v20 }
0x215e   :  { %v2445_v22 = vpop.eup %2444 }
0x215f   :  { %v1556_v25 = vmul.f32 %v2445_v22, %v1464_v6 }
0x21bf   :  { %v1559_v23 = vpop.permute.xlu0 %1558 }
0x21c0   :  { %v1561_v24 = vmul.f32 %v2445_v22, %v1559_v23 }
0x21c2   :  { %1563 = vrot.lane.b32.xlu1 %v1561_v24, %s2475_s3 }
0x2234   :  { %v1564_v26 = vpop.permute.xlu1 %1563 }
0x2235   :  { %v1566_v27 = vadd.f32 %v1564_v26, %v1556_v25  ;;  %v2019_v25 = vld [vmem:[%s2926_s8] ss:$0 sm:$0xff] }
0x2237   :  { %2446 = vtanh.f32 %v1566_v27 }
0x2244   :  { %v2447_v28 = vpop.eup %2446 }
0x2245   :  { %1569 = vrot.lane.b32.xlu0 %v2447_v28, %s2474_s15 }
0x22b7   :  { %v1570_v29 = vpop.permute.xlu0 %1569 }
0x22b8   :  { %v1572_v30 = vmul.f32 %v2445_v22, %v1570_v29 }
0x22ba   :  { %1574 = vrot.lane.b32.xlu1 %v1572_v30, %s2475_s3 }
0x232c   :  { %v1575_v31 = vpop.permute.xlu1 %1574 }
0x232d   :  { %1577 = vst.msk [vmem:[#allocation2 + $0x8] sm:$0x3] %vm1168_vm3, %v1575_v31  ;;  %2305 = vmatmul.mubr.msk.f32.vlgmr.msra.gmra.mxu0 %vm135_vm2, %v1575_v31 }
0x232e   :  { %2319 = vmatpush3.msra.mxu0 %v2723_v50  ;;  %2326 = vmatprep.mubr.msk.f32.mxu0 %vm2473_vm0, %v2472_v2 }
0x232f   :  { %2320 = vmatprep.subr.mxu0 %v2472_v2 }
0x2330   :  { %2321 = vmatpush3.msra.mxu0 %v2732_v52 }
0x2331   :  { %2322 = vmatprep.subr.mxu0 %v2472_v2 }
0x2332   :  { %2323 = vmatpush3.msra.mxu0 %v2742_v54 }
0x2333   :  { %2324 = vmatprep.subr.mxu0 %v2472_v2 }
0x2334   :  { %2325 = vmatpush3.msra.mxu0 %v2753_v56 }
0x23ed   :  { %v1646_v32 = vpop.f32.mrf.mxu0 }
0x23ee   :  { %v1650_v33 = vadd.f32 %v1646_v32, %v2788_v63 }
0x23ef   :  { %v2306_v34 = vpop.f32.mrf.mxu0 }
0x23f0   :  { %2448 = vtanh.f32 %v1650_v33  ;;  %v2014_v21 = vmul.f32 -1.442695, %v1650_v33 }
0x23f2   :  { %2450 = vpow2.f32 %v2014_v21 }
0x23fd   :  { %v2449_v50 = vpop.eup %2448 }
0x23fe   :  { %1660 = vrot.lane.b32.xlu0 %v2449_v50, %s2474_s15 }
0x23ff   :  { %v2451_v35 = vpop.eup %2450 }
0x2400   :  { %v1654_v52 = vadd.f32 1.0, %v2451_v35 }
0x2402   :  { %2452 = vrcp.f32 %v1654_v52 }
0x240f   :  { %v2453_v36 = vpop.eup %2452 }
0x2410   :  { %v1658_v2 = vmul.f32 %v2453_v36, %v1566_v27 }
0x2470   :  { %v1661_v37 = vpop.permute.xlu0 %1660 }
0x2471   :  { %v1663_v54 = vmul.f32 %v2453_v36, %v1661_v37 }
0x2473   :  { %1665 = vrot.lane.b32.xlu1 %v1663_v54, %s2475_s3 }
0x24e5   :  { %v1666_v56 = vpop.permute.xlu1 %1665 }
0x24e6   :  { %v1668_v38 = vadd.f32 %v1666_v56, %v1658_v2 }
0x24e8   :  { %2454 = vtanh.f32 %v1668_v38 }
0x24f5   :  { %v2455_v39 = vpop.eup %2454 }
0x24f6   :  { %1671 = vrot.lane.b32.xlu0 %v2455_v39, %s2474_s15 }
0x2568   :  { %v1672_v40 = vpop.permute.xlu0 %1671 }
0x2569   :  { %v1674_v41 = vmul.f32 %v2453_v36, %v1672_v40 }
0x256b   :  { %1676 = vrot.lane.b32.xlu1 %v1674_v41, %s2475_s3 }
0x25dd   :  { %v1677_v42 = vpop.permute.xlu1 %1676 }
0x25de   :  { %1679 = vst.msk [vmem:[#allocation2 + $0xa] sm:$0x3] %vm1168_vm3, %v1677_v42  ;;  %2316 = vmatmul.mubr.msk.f32.vlgmr.msra.gmra.mxu1 %vm135_vm2, %v1677_v42 }
0x25df   :  { %2337 = vmatprep.mubr.msk.f32.mxu1 %vm135_vm2, %v1884_v43  ;;  %2330 = vmatpush3.msra.mxu1 %v1889_v15 }
0x25e0   :  { %2331 = vmatprep.subr.mxu1 %v1888_v16 }
0x25e1   :  { %2332 = vmatpush3.msra.mxu1 %v1888_v16 }
0x25e2   :  { %2333 = vmatprep.subr.mxu1 %v1887_v17 }
0x25e3   :  { %2334 = vmatpush3.msra.mxu1 %v1887_v17 }
0x25e4   :  { %2335 = vmatprep.subr.mxu1 %v1886_v18 }
0x25e5   :  { %2336 = vmatpush3.msra.mxu1 %v1886_v18 }
0x269e   :  { %v1748_v44 = vpop.f32.mrf.mxu1 }
0x269f   :  { %v1752_v45 = vadd.f32 %v1748_v44, %v2788_v63 }
0x26a0   :  { %v2317_v46 = vpop.f32.mrf.mxu1 }
0x26a1   :  { %2456 = vtanh.f32 %v1752_v45  ;;  %v2016_v48 = vmul.f32 -1.442695, %v1752_v45 }
0x26a3   :  { %2458 = vpow2.f32 %v2016_v48 }
0x26ae   :  { %v2457_v47 = vpop.eup %2456 }
0x26af   :  { %1762 = vrot.lane.b32.xlu0 %v2457_v47, %s2474_s15 }
0x26b0   :  { %v2459_v49 = vpop.eup %2458 }
0x26b1   :  { %v1756_v19 = vadd.f32 1.0, %v2459_v49 }
0x26b3   :  { %2460 = vrcp.f32 %v1756_v19 }
0x26c0   :  { %v2461_v51 = vpop.eup %2460 }
0x26c1   :  { %v1760_v57 = vmul.f32 %v2461_v51, %v1668_v38 }
0x2721   :  { %v1763_v53 = vpop.permute.xlu0 %1762 }
0x2722   :  { %v1765_v55 = vmul.f32 %v2461_v51, %v1763_v53 }
0x2724   :  { %1767 = vrot.lane.b32.xlu1 %v1765_v55, %s2475_s3 }
0x2796   :  { %v1768_v58 = vpop.permute.xlu1 %1767 }
0x2797   :  { %v1770_v4 = vadd.f32 %v1768_v58, %v1760_v57 }
0x2799   :  { %2462 = vtanh.f32 %v1770_v4 }
0x27a6   :  { %v2463_v59 = vpop.eup %2462 }
0x27a7   :  { %1773 = vrot.lane.b32.xlu0 %v2463_v59, %s2474_s15 }
0x2819   :  { %v1774_v60 = vpop.permute.xlu0 %1773 }
0x281a   :  { %v1776_v5 = vmul.f32 %v2461_v51, %v1774_v60 }
0x281c   :  { %1778 = vrot.lane.b32.xlu1 %v1776_v5, %s2475_s3 }
0x288e   :  { %v1779_v61 = vpop.permute.xlu1 %1778 }
0x288f   :  { %1781 = vst.msk [vmem:[#allocation2 + $0xc] sm:$0x3] %vm1168_vm3, %v1779_v61  ;;  %2327 = vmatmul.mubr.msk.f32.vlgmr.msra.gmra.mxu0 %vm135_vm2, %v1779_v61 }
0x294f   :  { %v1850_v62 = vpop.f32.mrf.mxu0 }
0x2950   :  { %v1854_v8 = vadd.f32 %v1850_v62, %v2788_v63 }
0x2951   :  { %v2328_v0 = vpop.f32.mrf.mxu0 }
0x2952   :  { %2464 = vtanh.f32 %v1854_v8  ;;  %v2018_v1 = vmul.f32 -1.442695, %v1854_v8 }
0x2954   :  { %2466 = vpow2.f32 %v2018_v1 }
0x295f   :  { %v2465_v10 = vpop.eup %2464 }
0x2960   :  { %1864 = vrot.lane.b32.xlu0 %v2465_v10, %s2474_s15 }
0x2961   :  { %v2467_v3 = vpop.eup %2466 }
0x2962   :  { %v1858_v6 = vadd.f32 1.0, %v2467_v3 }
0x2964   :  { %2468 = vrcp.f32 %v1858_v6 }
0x2971   :  { %v2469_v7 = vpop.eup %2468 }
0x2972   :  { %v1862_v12 = vmul.f32 %v2469_v7, %v1770_v4 }
0x29d2   :  { %v1865_v9 = vpop.permute.xlu0 %1864 }
0x29d3   :  { %v1867_v11 = vmul.f32 %v2469_v7, %v1865_v9 }
0x29d5   :  { %1869 = vrot.lane.b32.xlu1 %v1867_v11, %s2475_s3 }
0x2a47   :  { %v1870_v13 = vpop.permute.xlu1 %1869 }
0x2a48   :  { %v1872_v14 = vadd.f32 %v1870_v13, %v1862_v12 }
0x2a4a   :  { %2470 = vtanh.f32 %v1872_v14 }
0x2a57   :  { %v2471_v63 = vpop.eup %2470 }
0x2a58   :  { %1875 = vrot.lane.b32.xlu0 %v2471_v63, %s2474_s15 }
0x2aca   :  { %v1876_v20 = vpop.permute.xlu0 %1875 }
0x2acb   :  { %v1878_v22 = vmul.f32 %v2469_v7, %v1876_v20 }
0x2acd   :  { %1880 = vrot.lane.b32.xlu1 %v1878_v22, %s2475_s3 }
0x2b3f   :  { %v1881_v23 = vpop.permute.xlu1 %1880 }
0x2b40   :  { %1883 = vst.msk [vmem:[#allocation2 + $0xe] sm:$0x3] %vm1168_vm3, %v1881_v23 }
0x2b47   :  { %v1885_v24 = vld [vmem:[#allocation2 + $0x8] sm:$0xff] }
0x2b48   :  { %2338 = vmatmul.mubr.msk.f32.vlgmr.msra.gmra.mxu1 %vm135_vm2, %v1885_v24 }
0x2c08   :  { %v2339_v26 = vpop.f32.mrf.mxu1 }
0x2c09   :  { %v1975_v27 = vadd.f32 %v2339_v26, %v2019_v25 }
0x2c0a   :  { %v1969_v28 = vpop.f32.mrf.mxu1 }
0x2c0b   :  { %1979 = vst.msk [vmem:[%s2927_s9 + $0x8] sm:$0xff] %vm49_vm1, %v1975_v27  ;;  %v1970_v29 = vadd.f32 %v2019_v25, %v1969_v28 }
0x2c0d   :  { %1978 = vst.msk [vmem:[%s2927_s9] sm:$0xff] %vm49_vm1, %v1970_v29 }

</bundles_post_ra>
